<compile_context>
chip_gen: v7x
topology: tpu7x:2x2x1
jax: 0.10.0
libtpu: 0.0.40
codegen_flags: <defaults>
</compile_context>

<pallas_src>
import sys

import jax
import jax.numpy as jnp
from jax.experimental import pallas as pl
from jax.experimental.pallas import tpu as pltpu


def _round_up(x, m):
    return ((x + m - 1) // m) * m


# ---------------------------------------------------------------------------
# Kernel: grid = (batch_tiles, k_chunks).  Each k chunk computes a slice of the
# fc1 output (ReLU'd) and accumulates its contribution to fc2 into an f32
# scratch; the last chunk finishes fc2 bias+ReLU, fc3+ReLU and fc4.
# All matmuls take bf16 operands and accumulate in f32 on the MXU.
# ---------------------------------------------------------------------------
def _mlp_kernel(x_ref, w1_ref, b1_ref, w2_ref, b2_ref, w3_ref, b3_ref,
                w4_ref, b4_ref, o_ref, acc_ref):
    k = pl.program_id(1)

    @pl.when(k == 0)
    def _():
        acc_ref[...] = jnp.zeros_like(acc_ref)

    # fc1 columns [k*k_tile, (k+1)*k_tile) + ReLU, then the matching partial fc2.
    x = x_ref[...].astype(jnp.bfloat16)          # f32 in HBM, bf16 into the MXU
    h1 = jnp.dot(x, w1_ref[...], preferred_element_type=jnp.float32)
    h1 = jnp.maximum(h1 + b1_ref[...], 0.0).astype(jnp.bfloat16)
    acc_ref[...] += jnp.dot(h1, w2_ref[...], preferred_element_type=jnp.float32)

    @pl.when(k == pl.num_programs(1) - 1)
    def _():
        h2 = jnp.maximum(acc_ref[...] + b2_ref[...], 0.0).astype(jnp.bfloat16)
        h3 = jnp.dot(h2, w3_ref[...], preferred_element_type=jnp.float32)
        h3 = jnp.maximum(h3 + b3_ref[...], 0.0).astype(jnp.bfloat16)
        logits = (jnp.dot(h3, w4_ref[...], preferred_element_type=jnp.float32)
                  + b4_ref[...])
        o_ref[...] = logits.astype(o_ref.dtype)


# ---------------------------------------------------------------------------
# One-time parameter preparation (hoisted out of the per-call path).
# ---------------------------------------------------------------------------
def prepare_params(params):
    """Cast weights to bf16 and pad the class dim to a multiple of 128 (lane-
    dense output).  Run ONCE at model init; the result is what forward() takes.
    params = (w1, b1, w2, b2, w3, b3, w4, b4), w_i (in, out), b_i (1, out)."""
    w1, b1, w2, b2, w3, b3, w4, b4 = params
    num_classes = w4.shape[1]
    c_pad = _round_up(num_classes, 128)
    pad_c = c_pad - num_classes
    return {
        "w1": jnp.asarray(w1, jnp.bfloat16),
        "b1": jnp.asarray(b1, jnp.float32).reshape(1, -1),
        "w2": jnp.asarray(w2, jnp.bfloat16),
        "b2": jnp.asarray(b2, jnp.float32).reshape(1, -1),
        "w3": jnp.asarray(w3, jnp.bfloat16),
        "b3": jnp.asarray(b3, jnp.float32).reshape(1, -1),
        "w4": jnp.pad(jnp.asarray(w4, jnp.float32),
                      ((0, 0), (0, pad_c))).astype(jnp.bfloat16),
        "b4": jnp.pad(jnp.asarray(b4, jnp.float32).reshape(1, -1),
                      ((0, 0), (0, pad_c))),
        "num_classes": num_classes,
        "c_pad": c_pad,
    }


# ---------------------------------------------------------------------------
# Forward pass wrapper.
# ---------------------------------------------------------------------------
def clip_change_forward(image_features, prepared, *, batch_tile=None,
                        k_tile=None, out_dtype=jnp.float32):
    """Fused 4-layer MLP head of CLIP_change on TPU.

    `prepared` comes from prepare_params() (bf16 weights, padded classes).
    batch_tile: rows per grid step (multiple of 16; 128-multiples preferred).
    k_tile:     fc1-output / fc2-input chunk used to pipeline weight DMA when
                the whole batch fits in one tile.
    """
    w1, b1 = prepared["w1"], prepared["b1"]
    w2, b2 = prepared["w2"], prepared["b2"]
    w3, b3 = prepared["w3"], prepared["b3"]
    w4, b4 = prepared["w4"], prepared["b4"]
    num_classes, c_pad = prepared["num_classes"], prepared["c_pad"]

    B, fc_in = image_features.shape
    h1_dim, h2_dim = w2.shape
    h3_dim = w3.shape[1]

    try:
        vmem_cap = pltpu.get_tpu_info().vmem_capacity_bytes
    except Exception:
        vmem_cap = 64 << 20                        # conservative: v7x per-TC VMEM
    vmem_limit = int(min(vmem_cap * 0.85, 100 << 20))

    # --- batch tiling: bf16 packs [16,128] per vreg -> multiples of 16; when B
    #     is large use 128-multiples; cap 256 on 64-MiB chips (v7x), 512 else.
    if batch_tile is None:
        max_tile = 256 if vmem_cap <= (64 << 20) else 512
        if B >= 128:
            batch_tile = min(max_tile, _round_up(B, 128))
        else:
            batch_tile = _round_up(max(B, 1), 16)
    batch_tile = _round_up(int(batch_tile), 16)
    B_pad = _round_up(B, batch_tile)
    n_bt = B_pad // batch_tile

    # --- fc1/fc2 contraction chunking: only used when a single batch tile
    #     would otherwise leave the entire weight DMA exposed before compute.
    if k_tile is None:
        k_tile = next((t for t in (512, 256, 128) if h1_dim % t == 0), h1_dim)
    k_tile = int(k_tile)
    if h1_dim % k_tile != 0 or (k_tile != h1_dim and k_tile % 128 != 0):
        k_tile = h1_dim
    chunked = (n_bt == 1) and (h1_dim // k_tile > 1)
    n_k = h1_dim // k_tile if chunked else 1

    # --- pad ragged batch; x stays f32 (cast to bf16 inside the kernel) -------
    x = image_features.astype(jnp.float32)
    if B_pad != B:
        x = jnp.pad(x, ((0, B_pad - B), (0, 0)))

    grid = (n_bt, n_k)

    def build(single_buffer_weights):
        def invariant(shape):
            # Grid-invariant weights/biases: single-buffer so the full weight
            # set is resident exactly once in VMEM (critical on v7x's 64 MiB).
            if single_buffer_weights:
                return pl.BlockSpec(shape, lambda i, k: (0, 0),
                                    pipeline_mode=pl.Buffered(1))
            return pl.BlockSpec(shape, lambda i, k: (0, 0))

        if chunked:
            # Pipelined weight chunks: chunk k+1's DMA overlaps chunk k's matmuls.
            w1_spec = pl.BlockSpec((fc_in, k_tile), lambda i, k: (0, k))
            b1_spec = pl.BlockSpec((1, k_tile), lambda i, k: (0, k))
            w2_spec = pl.BlockSpec((k_tile, h2_dim), lambda i, k: (k, 0))
        else:
            w1_spec = invariant((fc_in, h1_dim))
            b1_spec = invariant((1, h1_dim))
            w2_spec = invariant((h1_dim, h2_dim))

        return pl.pallas_call(
            _mlp_kernel,
            out_shape=jax.ShapeDtypeStruct((B_pad, c_pad), out_dtype),
            grid_spec=pltpu.PrefetchScalarGridSpec(
                num_scalar_prefetch=0,
                grid=grid,
                in_specs=[
                    pl.BlockSpec((batch_tile, fc_in), lambda i, k: (i, 0)),
                    w1_spec, b1_spec,
                    w2_spec, invariant((1, h2_dim)),
                    invariant((h2_dim, h3_dim)), invariant((1, h3_dim)),
                    invariant((h3_dim, c_pad)), invariant((1, c_pad)),
                ],
                out_specs=pl.BlockSpec((batch_tile, c_pad), lambda i, k: (i, 0)),
                scratch_shapes=[pltpu.VMEM((batch_tile, h2_dim), jnp.float32)],
            ),
            compiler_params=pltpu.CompilerParams(
                # batch axis "parallel" -> v7x's two TensorCores split it;
                # the k axis carries the fc2 accumulator -> "arbitrary".
                dimension_semantics=("parallel", "arbitrary"),
                vmem_limit_bytes=vmem_limit),
        )

    call_args = (x, w1, b1, w2, b2, w3, b3, w4, b4)
    try:
        out_padded = build(single_buffer_weights=True)(*call_args)
    except Exception as e:  # explicit, logged fallback — never silent
        print("WARNING: pl.Buffered(1) single-buffered weight blocks failed to "
              f"lower/run ({type(e).__name__}: {e}); falling back to "
              "double-buffered weights (2x weight VMEM footprint).",
              file=sys.stderr)
        out_padded = build(single_buffer_weights=False)(*call_args)

    return out_padded[:B, :num_classes]


# ---------------------------------------------------------------------------
# Synthetic params + pure-JAX reference (same bf16-in / f32-accumulate policy).
# ---------------------------------------------------------------------------
def make_params(key, fc_in, h1, h2, h3, num_classes):
    """Deterministic synthetic weights (shapes from the module's __init__)."""
    ks = jax.random.split(key, 8)

    def lin(kw, kb, d_in, d_out):
        bound = 1.0 / jnp.sqrt(d_in)
        w = jax.random.uniform(kw, (d_in, d_out), jnp.float32, -bound, bound)
        b = jax.random.uniform(kb, (1, d_out), jnp.float32, -bound, bound)
        return w, b

    w1, b1 = lin(ks[0], ks[1], fc_in, h1)
    w2, b2 = lin(ks[2], ks[3], h1, h2)
    w3, b3 = lin(ks[4], ks[5], h2, h3)
    w4, b4 = lin(ks[6], ks[7], h3, num_classes)
    return (w1, b1, w2, b2, w3, b3, w4, b4)


def reference_forward(x, params):
    w1, b1, w2, b2, w3, b3, w4, b4 = params
    bf = jnp.bfloat16
    h = x.astype(bf)
    h = jnp.maximum(jnp.dot(h, w1.astype(bf),
                            preferred_element_type=jnp.float32) + b1, 0.0).astype(bf)
    h = jnp.maximum(jnp.dot(h, w2.astype(bf),
                            preferred_element_type=jnp.float32) + b2, 0.0).astype(bf)
    h = jnp.maximum(jnp.dot(h, w3.astype(bf),
                            preferred_element_type=jnp.float32) + b3, 0.0).astype(bf)
    return jnp.dot(h, w4.astype(bf),
                   preferred_element_type=jnp.float32) + b4


if __name__ == "__main__":
    # Small shapes consistent with the module (real head: 512-2048-4096-512-C).
    # B=20 exercises the ragged-batch pad path; NUM_CLASSES=10 exercises the
    # lane-dense (pad-to-128) output path.
    B, FC_IN, H1, H2, H3, NUM_CLASSES = 20, 128, 256, 512, 128, 10
    # TODO(synk): the frozen CLIP visual backbone (clip.load / encode_image) is
    # not part of forward() — forward() takes pre-extracted image_features — so
    # it is intentionally not implemented here.

    key = jax.random.PRNGKey(0)
    k_x, k_p = jax.random.split(key)
    image_features = jax.random.normal(k_x, (B, FC_IN), dtype=jnp.float32)
    params = make_params(k_p, FC_IN, H1, H2, H3, NUM_CLASSES)
    prepared = prepare_params(params)          # one-time init (hoisted weight prep)

    ref = reference_forward(image_features, params)

    # 1) Default path: single batch tile, full resident weights (Buffered(1)).
    out = jax.block_until_ready(clip_change_forward(image_features, prepared))
    assert out.shape == (B, NUM_CLASSES)
    assert jnp.allclose(out, ref, atol=2e-2, rtol=2e-2), "mismatch (default)"

    # 2) Small-batch DMA-overlap path: fc1/fc2 contraction chunked over k.
    out2 = jax.block_until_ready(
        clip_change_forward(image_features, prepared, k_tile=128))
    assert out2.shape == (B, NUM_CLASSES)
    assert jnp.allclose(out2, ref, atol=2e-2, rtol=2e-2), "mismatch (k-chunked)"

    # 3) Multi-batch-tile grid with ragged remainder (resident weights reused).
    out3 = jax.block_until_ready(
        clip_change_forward(image_features, prepared, batch_tile=16))
    assert out3.shape == (B, NUM_CLASSES)
    assert jnp.allclose(out3, ref, atol=2e-2, rtol=2e-2), "mismatch (multi-tile)"

    print("KERNEL_OK")
</pallas_src>

<mosaic_0001>
module attributes {stable_mosaic.version = 11 : i64} {
  func.func @_mlp_kernel(%arg0: i32, %arg1: i32, %arg2: memref<32x128xf32, #tpu.memory_space<vmem>>, %arg3: memref<128x256xbf16, #tpu.memory_space<vmem>>, %arg4: memref<1x256xf32, #tpu.memory_space<vmem>>, %arg5: memref<256x512xbf16, #tpu.memory_space<vmem>>, %arg6: memref<1x512xf32, #tpu.memory_space<vmem>>, %arg7: memref<512x128xbf16, #tpu.memory_space<vmem>>, %arg8: memref<1x128xf32, #tpu.memory_space<vmem>>, %arg9: memref<128x128xbf16, #tpu.memory_space<vmem>>, %arg10: memref<1x128xf32, #tpu.memory_space<vmem>>, %arg11: memref<32x128xf32, #tpu.memory_space<vmem>>, %arg12: memref<32x512xf32, #tpu.memory_space<vmem>>) attributes {dimension_semantics = [#tpu.dimension_semantics<parallel>, #tpu.dimension_semantics<arbitrary>], iteration_bounds = array<i64: 1, 1>, scalar_prefetch = 0 : i64, scratch_operands = 1 : i64, tpu.core_type = #tpu.core_type<tc>, window_params = [{transform_indices = @transform_0, window_bounds = array<i64: 32, 128>}, {pipeline_mode = #tpu.pipeline_mode<synchronous>, transform_indices = @transform_1, window_bounds = array<i64: 128, 256>}, {pipeline_mode = #tpu.pipeline_mode<synchronous>, transform_indices = @transform_2, window_bounds = array<i64: 1, 256>}, {pipeline_mode = #tpu.pipeline_mode<synchronous>, transform_indices = @transform_3, window_bounds = array<i64: 256, 512>}, {pipeline_mode = #tpu.pipeline_mode<synchronous>, transform_indices = @transform_4, window_bounds = array<i64: 1, 512>}, {pipeline_mode = #tpu.pipeline_mode<synchronous>, transform_indices = @transform_5, window_bounds = array<i64: 512, 128>}, {pipeline_mode = #tpu.pipeline_mode<synchronous>, transform_indices = @transform_6, window_bounds = array<i64: 1, 128>}, {pipeline_mode = #tpu.pipeline_mode<synchronous>, transform_indices = @transform_7, window_bounds = array<i64: 128, 128>}, {pipeline_mode = #tpu.pipeline_mode<synchronous>, transform_indices = @transform_8, window_bounds = array<i64: 1, 128>}, {transform_indices = @transform_9, window_bounds = array<i64: 32, 128>}]} {
    %c0_i32 = arith.constant 0 : i32
    %0 = arith.cmpi eq, %arg1, %c0_i32 : i32
    %1 = arith.extui %0 : i1 to i32
    %c0_i32_0 = arith.constant 0 : i32
    %2 = arith.cmpi ne, %1, %c0_i32_0 : i32
    scf.if %2 {
      %cst_16 = arith.constant 0.000000e+00 : f32
      %21 = vector.broadcast %cst_16 : f32 to vector<32x512xf32>
      %c0_17 = arith.constant 0 : index
      %c0_18 = arith.constant 0 : index
      %22 = vector.load %arg12[%c0_17, %c0_18] : memref<32x512xf32, #tpu.memory_space<vmem>>, vector<32x512xf32>
      tpu.vector_store %arg12[%c0_17, %c0_18], %21 {strides = array<i32>} : memref<32x512xf32, #tpu.memory_space<vmem>>, vector<32x512xf32>,
    } else {
    }
    %c0 = arith.constant 0 : index
    %c0_1 = arith.constant 0 : index
    %3 = vector.load %arg2[%c0, %c0_1] : memref<32x128xf32, #tpu.memory_space<vmem>>, vector<32x128xf32>
    %4 = arith.truncf %3 : vector<32x128xf32> to vector<32x128xbf16>
    %c0_2 = arith.constant 0 : index
    %c0_3 = arith.constant 0 : index
    %5 = vector.load %arg3[%c0_2, %c0_3] : memref<128x256xbf16, #tpu.memory_space<vmem>>, vector<128x256xbf16>
    %cst = arith.constant dense<0.000000e+00> : vector<32x256xf32>
    %6 = tpu.matmul %4, %5, %cst {dimension_numbers = #tpu.dot_dimension_numbers<[1], [0], [0], [1], [0, 0, 1, 1], [], []>} : vector<32x128xbf16>, vector<128x256xbf16>, vector<32x256xf32> -> vector<32x256xf32>
    %c0_4 = arith.constant 0 : index
    %c0_5 = arith.constant 0 : index
    %7 = vector.load %arg4[%c0_4, %c0_5] : memref<1x256xf32, #tpu.memory_space<vmem>>, vector<1x256xf32>
    %8 = vector.broadcast %7 : vector<1x256xf32> to vector<32x256xf32>
    %9 = arith.addf %6, %8 : vector<32x256xf32>
    %cst_6 = arith.constant 0.000000e+00 : f32
    %10 = vector.broadcast %cst_6 : f32 to vector<32x256xf32>
    %11 = arith.maximumf %9, %10 : vector<32x256xf32>
    %12 = arith.truncf %11 : vector<32x256xf32> to vector<32x256xbf16>
    %c0_7 = arith.constant 0 : index
    %c0_8 = arith.constant 0 : index
    %13 = vector.load %arg12[%c0_7, %c0_8] : memref<32x512xf32, #tpu.memory_space<vmem>>, vector<32x512xf32>
    %c0_9 = arith.constant 0 : index
    %c0_10 = arith.constant 0 : index
    %14 = vector.load %arg5[%c0_9, %c0_10] : memref<256x512xbf16, #tpu.memory_space<vmem>>, vector<256x512xbf16>
    %cst_11 = arith.constant dense<0.000000e+00> : vector<32x512xf32>
    %15 = tpu.matmul %12, %14, %cst_11 {dimension_numbers = #tpu.dot_dimension_numbers<[1], [0], [0], [1], [0, 0, 1, 1], [], []>} : vector<32x256xbf16>, vector<256x512xbf16>, vector<32x512xf32> -> vector<32x512xf32>
    %16 = arith.addf %13, %15 : vector<32x512xf32>
    %c0_12 = arith.constant 0 : index
    %c0_13 = arith.constant 0 : index
    %17 = vector.load %arg12[%c0_12, %c0_13] : memref<32x512xf32, #tpu.memory_space<vmem>>, vector<32x512xf32>
    tpu.vector_store %arg12[%c0_12, %c0_13], %16 {strides = array<i32>} : memref<32x512xf32, #tpu.memory_space<vmem>>, vector<32x512xf32>,
    %c0_i32_14 = arith.constant 0 : i32
    %18 = arith.cmpi eq, %arg1, %c0_i32_14 : i32
    %19 = arith.extui %18 : i1 to i32
    %c0_i32_15 = arith.constant 0 : i32
    %20 = arith.cmpi ne, %19, %c0_i32_15 : i32
    scf.if %20 {
      %c0_16 = arith.constant 0 : index
      %c0_17 = arith.constant 0 : index
      %21 = vector.load %arg12[%c0_16, %c0_17] : memref<32x512xf32, #tpu.memory_space<vmem>>, vector<32x512xf32>
      %c0_18 = arith.constant 0 : index
      %c0_19 = arith.constant 0 : index
      %22 = vector.load %arg6[%c0_18, %c0_19] : memref<1x512xf32, #tpu.memory_space<vmem>>, vector<1x512xf32>
      %23 = vector.broadcast %22 : vector<1x512xf32> to vector<32x512xf32>
      %24 = arith.addf %21, %23 : vector<32x512xf32>
      %cst_20 = arith.constant 0.000000e+00 : f32
      %25 = vector.broadcast %cst_20 : f32 to vector<32x512xf32>
      %26 = arith.maximumf %24, %25 : vector<32x512xf32>
      %27 = arith.truncf %26 : vector<32x512xf32> to vector<32x512xbf16>
      %c0_21 = arith.constant 0 : index
      %c0_22 = arith.constant 0 : index
      %28 = vector.load %arg7[%c0_21, %c0_22] : memref<512x128xbf16, #tpu.memory_space<vmem>>, vector<512x128xbf16>
      %cst_23 = arith.constant dense<0.000000e+00> : vector<32x128xf32>
      %29 = tpu.matmul %27, %28, %cst_23 {dimension_numbers = #tpu.dot_dimension_numbers<[1], [0], [0], [1], [0, 0, 1, 1], [], []>} : vector<32x512xbf16>, vector<512x128xbf16>, vector<32x128xf32> -> vector<32x128xf32>
      %c0_24 = arith.constant 0 : index
      %c0_25 = arith.constant 0 : index
      %30 = vector.load %arg8[%c0_24, %c0_25] : memref<1x128xf32, #tpu.memory_space<vmem>>, vector<1x128xf32>
      %31 = vector.broadcast %30 : vector<1x128xf32> to vector<32x128xf32>
      %32 = arith.addf %29, %31 : vector<32x128xf32>
      %cst_26 = arith.constant 0.000000e+00 : f32
      %33 = vector.broadcast %cst_26 : f32 to vector<32x128xf32>
      %34 = arith.maximumf %32, %33 : vector<32x128xf32>
      %35 = arith.truncf %34 : vector<32x128xf32> to vector<32x128xbf16>
      %c0_27 = arith.constant 0 : index
      %c0_28 = arith.constant 0 : index
      %36 = vector.load %arg9[%c0_27, %c0_28] : memref<128x128xbf16, #tpu.memory_space<vmem>>, vector<128x128xbf16>
      %cst_29 = arith.constant dense<0.000000e+00> : vector<32x128xf32>
      %37 = tpu.matmul %35, %36, %cst_29 {dimension_numbers = #tpu.dot_dimension_numbers<[1], [0], [0], [1], [0, 0, 1, 1], [], []>} : vector<32x128xbf16>, vector<128x128xbf16>, vector<32x128xf32> -> vector<32x128xf32>
      %c0_30 = arith.constant 0 : index
      %c0_31 = arith.constant 0 : index
      %38 = vector.load %arg10[%c0_30, %c0_31] : memref<1x128xf32, #tpu.memory_space<vmem>>, vector<1x128xf32>
      %39 = vector.broadcast %38 : vector<1x128xf32> to vector<32x128xf32>
      %40 = arith.addf %37, %39 : vector<32x128xf32>
      %c0_32 = arith.constant 0 : index
      %c0_33 = arith.constant 0 : index
      %41 = vector.load %arg11[%c0_32, %c0_33] : memref<32x128xf32, #tpu.memory_space<vmem>>, vector<32x128xf32>
      tpu.vector_store %arg11[%c0_32, %c0_33], %40 {strides = array<i32>} : memref<32x128xf32, #tpu.memory_space<vmem>>, vector<32x128xf32>,
    } else {
    }
    return
  }
  func.func @transform_0(%arg0: i32, %arg1: i32) -> (i32, i32) {
    %c0_i32 = arith.constant 0 : i32
    %c0_i32_0 = arith.constant 0 : i32
    return %arg0, %c0_i32 : i32, i32
  }
  func.func @transform_1(%arg0: i32, %arg1: i32) -> (i32, i32) {
    %c0_i32 = arith.constant 0 : i32
    %c0_i32_0 = arith.constant 0 : i32
    %c0_i32_1 = arith.constant 0 : i32
    return %c0_i32, %c0_i32_0 : i32, i32
  }
  func.func @transform_2(%arg0: i32, %arg1: i32) -> (i32, i32) {
    %c0_i32 = arith.constant 0 : i32
    %c0_i32_0 = arith.constant 0 : i32
    %c0_i32_1 = arith.constant 0 : i32
    return %c0_i32, %c0_i32_0 : i32, i32
  }
  func.func @transform_3(%arg0: i32, %arg1: i32) -> (i32, i32) {
    %c0_i32 = arith.constant 0 : i32
    %c0_i32_0 = arith.constant 0 : i32
    %c0_i32_1 = arith.constant 0 : i32
    return %c0_i32, %c0_i32_0 : i32, i32
  }
  func.func @transform_4(%arg0: i32, %arg1: i32) -> (i32, i32) {
    %c0_i32 = arith.constant 0 : i32
    %c0_i32_0 = arith.constant 0 : i32
    %c0_i32_1 = arith.constant 0 : i32
    return %c0_i32, %c0_i32_0 : i32, i32
  }
  func.func @transform_5(%arg0: i32, %arg1: i32) -> (i32, i32) {
    %c0_i32 = arith.constant 0 : i32
    %c0_i32_0 = arith.constant 0 : i32
    %c0_i32_1 = arith.constant 0 : i32
    return %c0_i32, %c0_i32_0 : i32, i32
  }
  func.func @transform_6(%arg0: i32, %arg1: i32) -> (i32, i32) {
    %c0_i32 = arith.constant 0 : i32
    %c0_i32_0 = arith.constant 0 : i32
    %c0_i32_1 = arith.constant 0 : i32
    return %c0_i32, %c0_i32_0 : i32, i32
  }
  func.func @transform_7(%arg0: i32, %arg1: i32) -> (i32, i32) {
    %c0_i32 = arith.constant 0 : i32
    %c0_i32_0 = arith.constant 0 : i32
    %c0_i32_1 = arith.constant 0 : i32
    return %c0_i32, %c0_i32_0 : i32, i32
  }
  func.func @transform_8(%arg0: i32, %arg1: i32) -> (i32, i32) {
    %c0_i32 = arith.constant 0 : i32
    %c0_i32_0 = arith.constant 0 : i32
    %c0_i32_1 = arith.constant 0 : i32
    return %c0_i32, %c0_i32_0 : i32, i32
  }
  func.func @transform_9(%arg0: i32, %arg1: i32) -> (i32, i32) {
    %c0_i32 = arith.constant 0 : i32
    %c0_i32_0 = arith.constant 0 : i32
    return %arg0, %c0_i32 : i32, i32
  }
}

module attributes {stable_mosaic.version = 11 : i64} {
  func.func @_mlp_kernel(%arg0: i32, %arg1: i32, %arg2: memref<32x128xf32, #tpu.memory_space<vmem>>, %arg3: memref<128x256xbf16, #tpu.memory_space<vmem>>, %arg4: memref<1x256xf32, #tpu.memory_space<vmem>>, %arg5: memref<256x512xbf16, #tpu.memory_space<vmem>>, %arg6: memref<1x512xf32, #tpu.memory_space<vmem>>, %arg7: memref<512x128xbf16, #tpu.memory_space<vmem>>, %arg8: memref<1x128xf32, #tpu.memory_space<vmem>>, %arg9: memref<128x128xbf16, #tpu.memory_space<vmem>>, %arg10: memref<1x128xf32, #tpu.memory_space<vmem>>, %arg11: memref<32x128xf32, #tpu.memory_space<vmem>>, %arg12: memref<32x512xf32, #tpu.memory_space<vmem>>) attributes {dimension_semantics = [#tpu.dimension_semantics<parallel>, #tpu.dimension_semantics<arbitrary>], iteration_bounds = array<i64: 1, 1>, scalar_prefetch = 0 : i64, scratch_operands = 1 : i64, tpu.core_type = #tpu.core_type<tc>, window_params = [{transform_indices = @transform_0, window_bounds = array<i64: 32, 128>}, {pipeline_mode = #tpu.pipeline_mode<synchronous>, transform_indices = @transform_1, window_bounds = array<i64: 128, 256>}, {pipeline_mode = #tpu.pipeline_mode<synchronous>, transform_indices = @transform_2, window_bounds = array<i64: 1, 256>}, {pipeline_mode = #tpu.pipeline_mode<synchronous>, transform_indices = @transform_3, window_bounds = array<i64: 256, 512>}, {pipeline_mode = #tpu.pipeline_mode<synchronous>, transform_indices = @transform_4, window_bounds = array<i64: 1, 512>}, {pipeline_mode = #tpu.pipeline_mode<synchronous>, transform_indices = @transform_5, window_bounds = array<i64: 512, 128>}, {pipeline_mode = #tpu.pipeline_mode<synchronous>, transform_indices = @transform_6, window_bounds = array<i64: 1, 128>}, {pipeline_mode = #tpu.pipeline_mode<synchronous>, transform_indices = @transform_7, window_bounds = array<i64: 128, 128>}, {pipeline_mode = #tpu.pipeline_mode<synchronous>, transform_indices = @transform_8, window_bounds = array<i64: 1, 128>}, {transform_indices = @transform_9, window_bounds = array<i64: 32, 128>}]} {
    %c0_i32 = arith.constant 0 : i32
    %0 = arith.cmpi eq, %arg1, %c0_i32 : i32
    %1 = arith.extui %0 : i1 to i32
    %c0_i32_0 = arith.constant 0 : i32
    %2 = arith.cmpi ne, %1, %c0_i32_0 : i32
    scf.if %2 {
      %cst_16 = arith.constant 0.000000e+00 : f32
      %21 = vector.broadcast %cst_16 : f32 to vector<32x512xf32>
      %c0_17 = arith.constant 0 : index
      %c0_18 = arith.constant 0 : index
      %22 = vector.load %arg12[%c0_17, %c0_18] : memref<32x512xf32, #tpu.memory_space<vmem>>, vector<32x512xf32>
      tpu.vector_store %arg12[%c0_17, %c0_18], %21 {strides = array<i32>} : memref<32x512xf32, #tpu.memory_space<vmem>>, vector<32x512xf32>,
    } else {
    }
    %c0 = arith.constant 0 : index
    %c0_1 = arith.constant 0 : index
    %3 = vector.load %arg2[%c0, %c0_1] : memref<32x128xf32, #tpu.memory_space<vmem>>, vector<32x128xf32>
    %4 = arith.truncf %3 : vector<32x128xf32> to vector<32x128xbf16>
    %c0_2 = arith.constant 0 : index
    %c0_3 = arith.constant 0 : index
    %5 = vector.load %arg3[%c0_2, %c0_3] : memref<128x256xbf16, #tpu.memory_space<vmem>>, vector<128x256xbf16>
    %cst = arith.constant dense<0.000000e+00> : vector<32x256xf32>
    %6 = tpu.matmul %4, %5, %cst {dimension_numbers = #tpu.dot_dimension_numbers<[1], [0], [0], [1], [0, 0, 1, 1], [], []>} : vector<32x128xbf16>, vector<128x256xbf16>, vector<32x256xf32> -> vector<32x256xf32>
    %c0_4 = arith.constant 0 : index
    %c0_5 = arith.constant 0 : index
    %7 = vector.load %arg4[%c0_4, %c0_5] : memref<1x256xf32, #tpu.memory_space<vmem>>, vector<1x256xf32>
    %8 = vector.broadcast %7 : vector<1x256xf32> to vector<32x256xf32>
    %9 = arith.addf %6, %8 : vector<32x256xf32>
    %cst_6 = arith.constant 0.000000e+00 : f32
    %10 = vector.broadcast %cst_6 : f32 to vector<32x256xf32>
    %11 = arith.maximumf %9, %10 : vector<32x256xf32>
    %12 = arith.truncf %11 : vector<32x256xf32> to vector<32x256xbf16>
    %c0_7 = arith.constant 0 : index
    %c0_8 = arith.constant 0 : index
    %13 = vector.load %arg12[%c0_7, %c0_8] : memref<32x512xf32, #tpu.memory_space<vmem>>, vector<32x512xf32>
    %c0_9 = arith.constant 0 : index
    %c0_10 = arith.constant 0 : index
    %14 = vector.load %arg5[%c0_9, %c0_10] : memref<256x512xbf16, #tpu.memory_space<vmem>>, vector<256x512xbf16>
    %cst_11 = arith.constant dense<0.000000e+00> : vector<32x512xf32>
    %15 = tpu.matmul %12, %14, %cst_11 {dimension_numbers = #tpu.dot_dimension_numbers<[1], [0], [0], [1], [0, 0, 1, 1], [], []>} : vector<32x256xbf16>, vector<256x512xbf16>, vector<32x512xf32> -> vector<32x512xf32>
    %16 = arith.addf %13, %15 : vector<32x512xf32>
    %c0_12 = arith.constant 0 : index
    %c0_13 = arith.constant 0 : index
    %17 = vector.load %arg12[%c0_12, %c0_13] : memref<32x512xf32, #tpu.memory_space<vmem>>, vector<32x512xf32>
    tpu.vector_store %arg12[%c0_12, %c0_13], %16 {strides = array<i32>} : memref<32x512xf32, #tpu.memory_space<vmem>>, vector<32x512xf32>,
    %c0_i32_14 = arith.constant 0 : i32
    %18 = arith.cmpi eq, %arg1, %c0_i32_14 : i32
    %19 = arith.extui %18 : i1 to i32
    %c0_i32_15 = arith.constant 0 : i32
    %20 = arith.cmpi ne, %19, %c0_i32_15 : i32
    scf.if %20 {
      %c0_16 = arith.constant 0 : index
      %c0_17 = arith.constant 0 : index
      %21 = vector.load %arg12[%c0_16, %c0_17] : memref<32x512xf32, #tpu.memory_space<vmem>>, vector<32x512xf32>
      %c0_18 = arith.constant 0 : index
      %c0_19 = arith.constant 0 : index
      %22 = vector.load %arg6[%c0_18, %c0_19] : memref<1x512xf32, #tpu.memory_space<vmem>>, vector<1x512xf32>
      %23 = vector.broadcast %22 : vector<1x512xf32> to vector<32x512xf32>
      %24 = arith.addf %21, %23 : vector<32x512xf32>
      %cst_20 = arith.constant 0.000000e+00 : f32
      %25 = vector.broadcast %cst_20 : f32 to vector<32x512xf32>
      %26 = arith.maximumf %24, %25 : vector<32x512xf32>
      %27 = arith.truncf %26 : vector<32x512xf32> to vector<32x512xbf16>
      %c0_21 = arith.constant 0 : index
      %c0_22 = arith.constant 0 : index
      %28 = vector.load %arg7[%c0_21, %c0_22] : memref<512x128xbf16, #tpu.memory_space<vmem>>, vector<512x128xbf16>
      %cst_23 = arith.constant dense<0.000000e+00> : vector<32x128xf32>
      %29 = tpu.matmul %27, %28, %cst_23 {dimension_numbers = #tpu.dot_dimension_numbers<[1], [0], [0], [1], [0, 0, 1, 1], [], []>} : vector<32x512xbf16>, vector<512x128xbf16>, vector<32x128xf32> -> vector<32x128xf32>
      %c0_24 = arith.constant 0 : index
      %c0_25 = arith.constant 0 : index
      %30 = vector.load %arg8[%c0_24, %c0_25] : memref<1x128xf32, #tpu.memory_space<vmem>>, vector<1x128xf32>
      %31 = vector.broadcast %30 : vector<1x128xf32> to vector<32x128xf32>
      %32 = arith.addf %29, %31 : vector<32x128xf32>
      %cst_26 = arith.constant 0.000000e+00 : f32
      %33 = vector.broadcast %cst_26 : f32 to vector<32x128xf32>
      %34 = arith.maximumf %32, %33 : vector<32x128xf32>
      %35 = arith.truncf %34 : vector<32x128xf32> to vector<32x128xbf16>
      %c0_27 = arith.constant 0 : index
      %c0_28 = arith.constant 0 : index
      %36 = vector.load %arg9[%c0_27, %c0_28] : memref<128x128xbf16, #tpu.memory_space<vmem>>, vector<128x128xbf16>
      %cst_29 = arith.constant dense<0.000000e+00> : vector<32x128xf32>
      %37 = tpu.matmul %35, %36, %cst_29 {dimension_numbers = #tpu.dot_dimension_numbers<[1], [0], [0], [1], [0, 0, 1, 1], [], []>} : vector<32x128xbf16>, vector<128x128xbf16>, vector<32x128xf32> -> vector<32x128xf32>
      %c0_30 = arith.constant 0 : index
      %c0_31 = arith.constant 0 : index
      %38 = vector.load %arg10[%c0_30, %c0_31] : memref<1x128xf32, #tpu.memory_space<vmem>>, vector<1x128xf32>
      %39 = vector.broadcast %38 : vector<1x128xf32> to vector<32x128xf32>
      %40 = arith.addf %37, %39 : vector<32x128xf32>
      %c0_32 = arith.constant 0 : index
      %c0_33 = arith.constant 0 : index
      %41 = vector.load %arg11[%c0_32, %c0_33] : memref<32x128xf32, #tpu.memory_space<vmem>>, vector<32x128xf32>
      tpu.vector_store %arg11[%c0_32, %c0_33], %40 {strides = array<i32>} : memref<32x128xf32, #tpu.memory_space<vmem>>, vector<32x128xf32>,
    } else {
    }
    return
  }
  func.func @transform_0(%arg0: i32, %arg1: i32) -> (i32, i32) {
    %c0_i32 = arith.constant 0 : i32
    %c0_i32_0 = arith.constant 0 : i32
    return %arg0, %c0_i32 : i32, i32
  }
  func.func @transform_1(%arg0: i32, %arg1: i32) -> (i32, i32) {
    %c0_i32 = arith.constant 0 : i32
    %c0_i32_0 = arith.constant 0 : i32
    %c0_i32_1 = arith.constant 0 : i32
    return %c0_i32, %c0_i32_0 : i32, i32
  }
  func.func @transform_2(%arg0: i32, %arg1: i32) -> (i32, i32) {
    %c0_i32 = arith.constant 0 : i32
    %c0_i32_0 = arith.constant 0 : i32
    %c0_i32_1 = arith.constant 0 : i32
    return %c0_i32, %c0_i32_0 : i32, i32
  }
  func.func @transform_3(%arg0: i32, %arg1: i32) -> (i32, i32) {
    %c0_i32 = arith.constant 0 : i32
    %c0_i32_0 = arith.constant 0 : i32
    %c0_i32_1 = arith.constant 0 : i32
    return %c0_i32, %c0_i32_0 : i32, i32
  }
  func.func @transform_4(%arg0: i32, %arg1: i32) -> (i32, i32) {
    %c0_i32 = arith.constant 0 : i32
    %c0_i32_0 = arith.constant 0 : i32
    %c0_i32_1 = arith.constant 0 : i32
    return %c0_i32, %c0_i32_0 : i32, i32
  }
  func.func @transform_5(%arg0: i32, %arg1: i32) -> (i32, i32) {
    %c0_i32 = arith.constant 0 : i32
    %c0_i32_0 = arith.constant 0 : i32
    %c0_i32_1 = arith.constant 0 : i32
    return %c0_i32, %c0_i32_0 : i32, i32
  }
  func.func @transform_6(%arg0: i32, %arg1: i32) -> (i32, i32) {
    %c0_i32 = arith.constant 0 : i32
    %c0_i32_0 = arith.constant 0 : i32
    %c0_i32_1 = arith.constant 0 : i32
    return %c0_i32, %c0_i32_0 : i32, i32
  }
  func.func @transform_7(%arg0: i32, %arg1: i32) -> (i32, i32) {
    %c0_i32 = arith.constant 0 : i32
    %c0_i32_0 = arith.constant 0 : i32
    %c0_i32_1 = arith.constant 0 : i32
    return %c0_i32, %c0_i32_0 : i32, i32
  }
  func.func @transform_8(%arg0: i32, %arg1: i32) -> (i32, i32) {
    %c0_i32 = arith.constant 0 : i32
    %c0_i32_0 = arith.constant 0 : i32
    %c0_i32_1 = arith.constant 0 : i32
    return %c0_i32, %c0_i32_0 : i32, i32
  }
  func.func @transform_9(%arg0: i32, %arg1: i32) -> (i32, i32) {
    %c0_i32 = arith.constant 0 : i32
    %c0_i32_0 = arith.constant 0 : i32
    return %arg0, %c0_i32 : i32, i32
  }
}

</mosaic_0001>

<bundles_post_ra>
// kernel: tpu_custom_call.1
= control target key start
LH: loop header
LB: loop body
LE: loop exit
PB: predicated region body
PF: predicated region fallthrough
CT: control target
= control target key end

     0   :  { %14 = vsyncpa [#allocation4], 0  ;;  %s2143_s0 = inlined_call_operand.hbm [shape: f32[32,128], index: 0, kind: input, shape index: {}]   ;;  %s2144_s1 = inlined_call_operand.hbm [shape: bf16[128,256], index: 1, kind: input, shape index: {}]   ;;  %s2145_s2 = inlined_call_operand.vmem [shape: f32[1,256], index: 2, kind: input, shape index: {}]   ;;  %s2146_s3 = inlined_call_operand.hbm [shape: bf16[256,512], index: 3, kind: input, shape index: {}]   ;;  %s2147_s4 = inlined_call_operand.vmem [shape: f32[1,512], index: 4, kind: input, shape index: {}]   ;;  %s2148_s5 = inlined_call_operand.hbm [shape: bf16[512,128], index: 5, kind: input, shape index: {}]   ;;  %s2149_s6 = inlined_call_operand.vmem [shape: f32[1,128], index: 6, kind: input, shape index: {}]   ;;  %s2150_s7 = inlined_call_operand.hbm [shape: bf16[128,128], index: 7, kind: input, shape index: {}]   ;;  %s2151_s8 = inlined_call_operand.vmem [shape: f32[1,128], index: 8, kind: input, shape index: {}]   ;;  %s2152_s9 = inlined_call_operand.hbm [shape: f32[32,128], index: 9, kind: output, shape index: {}]  }
   0x1   :  { %15 = vsyncpa [#allocation7], 0 }
   0x2   :  { %16 = vsyncpa [#allocation10], 0 }
   0x3   :  { %17 = vsyncpa [#allocation5], 0  ;;  %s1951_s30 = smov [#allocation6]   ;;  %s1952_s11 = smov [#allocation9]  }
   0x4   :  { %s35_s10 = sshll.u32 %s1951_s30, 4  ;;  %s63_s12 = sshll.u32 %s1952_s11, 4  ;;  %s36_s10 = int_to_ptr.vmem [resolvable:$true] %s35_s10  ;;  %s2014_s12 = int_to_ptr.vmem [resolvable:$true] %s63_s12 }
   0x5   :  { %s1811_s15 = scalar_lea.hbm %s2144_s1, 2048 }
   0x6   :  { %p1812_p0 = scmp.ne.s32.totalorder %s2144_s1, %s1811_s15  ;;  %p1815_p1 = scmp.lt.u32.totalorder %s1811_s15, %s2144_s1 }
   0x8   :  { %p1817_p2 = pnand %p1815_p1, %p1812_p0 }
   0xa   :  { %1820 = shalt.err (!%p1817_p2)
}
   0xb   :  { %s1821_s20 = scalar_lea.vmem %s36_s10, 2048  ;;  %p1826_p4 = scmp.lt.s32.totalorder %s36_s10, %s36_s10 }
   0xc   :  { %p1822_p3 = scmp.ne.s32.totalorder %s36_s10, %s1821_s20  ;;  %p1827_p5 = scmp.lt.s32.totalorder %s1821_s20, %s1821_s20 }
   0xe   :  { %p1828_p6 = por %p1827_p5, %p1826_p4 }
  0x10   :  { %p1829_p7 = pnand %p1828_p6, %p1822_p3 }
  0x12   :  { %1832 = shalt.err (!%p1829_p7)
}
  0x13   :  { %s1953_s21 = smov 128   ;;  %s1954_s22 = smov 8  }
  0x14   :  { %41 = dma.hbm_to_vmem [thread:$0]  %s2144_s1, 2048, %s36_s10, [#allocation7], %s1953_s21, %s1953_s21, %s1954_s22  }
  0x15   :  { %s1833_s27 = scalar_lea.hbm %s2148_s5, 4096 }
  0x16   :  { %p1834_p8 = scmp.ne.s32.totalorder %s2148_s5, %s1833_s27  ;;  %p1837_p9 = scmp.lt.u32.totalorder %s1833_s27, %s2148_s5 }
  0x18   :  { %p1839_p10 = pnand %p1837_p9, %p1834_p8 }
  0x1a   :  { %1842 = shalt.err (!%p1839_p10)
}
  0x1b   :  { %s1843_s13 = scalar_lea.vmem %s2014_s12, 4096  ;;  %p1848_p12 = scmp.lt.s32.totalorder %s2014_s12, %s2014_s12 }
  0x1c   :  { %p1844_p11 = scmp.ne.s32.totalorder %s2014_s12, %s1843_s13  ;;  %p1849_p13 = scmp.lt.s32.totalorder %s1843_s13, %s1843_s13 }
  0x1e   :  { %p1850_p0 = por %p1849_p13, %p1848_p12 }
  0x20   :  { %p1851_p1 = pnand %p1850_p0, %p1844_p11 }
  0x22   :  { %1854 = shalt.err (!%p1851_p1)
}
  0x23   :  { %s1955_s1 = smov 64   ;;  %s1956_s10 = smov 4  }
  0x24   :  { %69 = dma.hbm_to_vmem [thread:$0]  %s2148_s5, 4096, %s2014_s12, [#allocation10], %s1955_s1, %s1955_s1, %s1956_s10  }
  0x25   :  { %s1957_s16 = smov [#allocation3]   ;;  %s1958_s18 = smov [#allocation8]  }
  0x26   :  { %s23_s17 = sshll.u32 %s1957_s16, 4  ;;  %s49_s19 = sshll.u32 %s1958_s18, 4  ;;  %s24_s17 = int_to_ptr.vmem [resolvable:$true] %s23_s17  ;;  %s2051_s19 = int_to_ptr.vmem [resolvable:$true] %s49_s19 }
  0x27   :  { %s1855_s24 = scalar_lea.hbm %s2143_s0, 512 }
  0x28   :  { %p1856_p2 = scmp.ne.s32.totalorder %s2143_s0, %s1855_s24  ;;  %p1859_p3 = scmp.lt.u32.totalorder %s1855_s24, %s2143_s0 }
  0x2a   :  { %p1861_p4 = pnand %p1859_p3, %p1856_p2 }
  0x2c   :  { %1864 = shalt.err (!%p1861_p4)
}
  0x2d   :  { %s1865_s5 = scalar_lea.vmem %s24_s17, 512  ;;  %p1870_p6 = scmp.lt.s32.totalorder %s24_s17, %s24_s17 }
  0x2e   :  { %p1866_p5 = scmp.ne.s32.totalorder %s24_s17, %s1865_s5  ;;  %p1871_p7 = scmp.lt.s32.totalorder %s1865_s5, %s1865_s5 }
  0x30   :  { %p1872_p8 = por %p1871_p7, %p1870_p6 }
  0x32   :  { %p1873_p9 = pnand %p1872_p8, %p1866_p5 }
  0x34   :  { %1876 = shalt.err (!%p1873_p9)
}
  0x35   :  { %29 = dma.hbm_to_vmem [thread:$0]  %s2143_s0, 512, %s24_s17, [#allocation4], %s1953_s21, %s1953_s21, %s1954_s22  }
  0x36   :  { %s1877_s13 = scalar_lea.hbm %s2146_s3, 8192 }
  0x37   :  { %p1878_p10 = scmp.ne.s32.totalorder %s2146_s3, %s1877_s13  ;;  %p1881_p11 = scmp.lt.u32.totalorder %s1877_s13, %s2146_s3 }
  0x39   :  { %p1883_p12 = pnand %p1881_p11, %p1878_p10 }
  0x3b   :  { %1886 = shalt.err (!%p1883_p12)
}
  0x3c   :  { %s1887_s20 = scalar_lea.vmem %s2051_s19, 8192  ;;  %p1892_p0 = scmp.lt.s32.totalorder %s2051_s19, %s2051_s19 }
  0x3d   :  { %p1888_p13 = scmp.ne.s32.totalorder %s2051_s19, %s1887_s20  ;;  %p1893_p1 = scmp.lt.s32.totalorder %s1887_s20, %s1887_s20 }
  0x3f   :  { %p1894_p2 = por %p1893_p1, %p1892_p0 }
  0x41   :  { %p1895_p3 = pnand %p1894_p2, %p1888_p13 }
  0x43   :  { %1898 = shalt.err (!%p1895_p3)
}
  0x44   :  { %s1959_s0 = smov 256   ;;  %s1960_s17 = smov 16  }
  0x45   :  { %55 = dma.hbm_to_vmem [thread:$0]  %s2146_s3, 8192, %s2051_s19, [#allocation7], %s1959_s0, %s1959_s0, %s1960_s17  }
  0x46   :  { %s1961_s25 = smov [#allocation11]   ;;  %s1899_s5 = scalar_lea.hbm %s2150_s7, 1024 }
  0x47   :  { %s77_s26 = sshll.u32 %s1961_s25, 4  ;;  %p1900_p4 = scmp.ne.s32.totalorder %s2150_s7, %s1899_s5  ;;  %s78_s26 = int_to_ptr.vmem [resolvable:$true] %s77_s26 }
  0x48   :  { %p1903_p5 = scmp.lt.u32.totalorder %s1899_s5, %s2150_s7 }
  0x4a   :  { %p1905_p6 = pnand %p1903_p5, %p1900_p4 }
  0x4c   :  { %1908 = shalt.err (!%p1905_p6)
}
  0x4d   :  { %s1909_s13 = scalar_lea.vmem %s78_s26, 1024  ;;  %p1914_p8 = scmp.lt.s32.totalorder %s78_s26, %s78_s26 }
  0x4e   :  { %p1910_p7 = scmp.ne.s32.totalorder %s78_s26, %s1909_s13  ;;  %p1915_p9 = scmp.lt.s32.totalorder %s1909_s13, %s1909_s13 }
  0x50   :  { %p1916_p10 = por %p1915_p9, %p1914_p8 }
  0x52   :  { %p1917_p11 = pnand %p1916_p10, %p1910_p7 }
  0x54   :  { %1920 = shalt.err (!%p1917_p11)
}
  0x55   :  { %83 = dma.hbm_to_vmem [thread:$0]  %s2150_s7, 1024, %s78_s26, [#allocation10], %s1955_s1, %s1955_s1, %s1956_s10  }
  0x56   :  { %1943 = dma.done.wait [#allocation4], 512  }
  0x57   :  { %1944 = vsyncadd [#allocation4], 4294966784 }
  0x58   :  { %1945 = dma.done.wait [#allocation7], 10240  }
  0x59   :  { %1946 = vsyncadd [#allocation7], 4294957056 }
  0x5a   :  { %1947 = dma.done.wait [#allocation10], 5120  }
  0x5b   :  { %1948 = vsyncadd [#allocation10], 4294962176  ;;  %v1962_v0 = vmov 0   ;;  %v1651_v1 = vld [vmem:[#allocation6 + $0x4] ss:$8 sps:$4 sm:$0xff]   ;;  %v124_v36 = vld [vmem:[#allocation3 + $0x10] sm:$0xff] }
  0x5c   :  { %268 = vmatprep.mubr.bf16.mxu0 %v1962_v0  ;;  %v1653_v2 = vld [vmem:[#allocation6] ss:$8 sps:$4 sm:$0xff]   ;;  %236 = vmatprep.subr.bf16.mxu0 %v1651_v1  ;;  %v1654_v3 = vld [vmem:[#allocation6 + $0x14] ss:$8 sps:$4 sm:$0xff]   ;;  %v1656_v4 = vld [vmem:[#allocation6 + $0x10] ss:$8 sps:$4 sm:$0xff]  }
  0x5d   :  { %237 = vmatpush1.bf16.msra.mxu0 %v1653_v2  ;;  %v1657_v5 = vld [vmem:[#allocation6 + $0x24] ss:$8 sps:$4 sm:$0xff]   ;;  %v1659_v6 = vld [vmem:[#allocation6 + $0x20] ss:$8 sps:$4 sm:$0xff]   ;;  %v1660_v7 = vld [vmem:[#allocation6 + $0x34] ss:$8 sps:$4 sm:$0xff]  }
  0x5e   :  { %238 = vmatprep.subr.bf16.mxu0 %v1654_v3  ;;  %v1662_v8 = vld [vmem:[#allocation6 + $0x30] ss:$8 sps:$4 sm:$0xff]   ;;  %v1663_v9 = vld [vmem:[#allocation6 + $0x44] ss:$8 sps:$4 sm:$0xff]   ;;  %v1665_v11 = vld [vmem:[#allocation6 + $0x40] ss:$8 sps:$4 sm:$0xff]  }
  0x5f   :  { %v1675_v10 = vld [vmem:[#allocation8 + $0x4] ss:$16 sps:$4 sm:$0xff]   ;;  %v1680_v12 = vld [vmem:[#allocation8] ss:$16 sps:$4 sm:$0xff]   ;;  %v123_v27 = vld [vmem:[#allocation3 + $0x8] sm:$0xff]  ;;  %s1963_s16 = smov [#allocation12]  }
  0x60   :  { %701 = vmatprep.subr.bf16.mxu1 %v1675_v10  ;;  %v1681_v13 = vld [vmem:[#allocation8 + $0x24] ss:$16 sps:$4 sm:$0xff]   ;;  %v1686_v15 = vld [vmem:[#allocation8 + $0x20] ss:$16 sps:$4 sm:$0xff]   ;;  %v1679_v28 = vld [vmem:[#allocation8 + $0xc] ss:$16 sps:$4 sm:$0xff]  }
  0x61   :  { %239 = vmatpush1.bf16.msra.mxu0 %v1656_v4  ;;  %v1666_v14 = vld [vmem:[#allocation6 + $0x54] ss:$8 sps:$4 sm:$0xff]   ;;  %702 = vmatpush1.bf16.msra.mxu1 %v1680_v12  ;;  %v1668_v17 = vld [vmem:[#allocation6 + $0x50] ss:$8 sps:$4 sm:$0xff]   ;;  %v1669_v18 = vld [vmem:[#allocation6 + $0x64] ss:$8 sps:$4 sm:$0xff]  }
  0x62   :  { %240 = vmatprep.subr.bf16.mxu0 %v1657_v5  ;;  %703 = vmatprep.subr.bf16.mxu1 %v1681_v13  ;;  %v1687_v16 = vld [vmem:[#allocation8 + $0x44] ss:$16 sps:$4 sm:$0xff]   ;;  %v1692_v19 = vld [vmem:[#allocation8 + $0x40] ss:$16 sps:$4 sm:$0xff]   ;;  %v1677_v32 = vld [vmem:[#allocation8 + $0x8] ss:$16 sps:$4 sm:$0xff]  }
  0x63   :  { %v1693_v20 = vld [vmem:[#allocation8 + $0x64] ss:$16 sps:$4 sm:$0xff]   ;;  %v1671_v21 = vld [vmem:[#allocation6 + $0x60] ss:$8 sps:$4 sm:$0xff]   ;;  %v1674_v25 = vld [vmem:[#allocation6 + $0x70] ss:$8 sps:$4 sm:$0xff]  }
  0x64   :  { %v1672_v22 = vld [vmem:[#allocation6 + $0x74] ss:$8 sps:$4 sm:$0xff]   ;;  %v1698_v23 = vld [vmem:[#allocation8 + $0x60] ss:$16 sps:$4 sm:$0xff]   ;;  %v1683_v38 = vld [vmem:[#allocation8 + $0x28] ss:$16 sps:$4 sm:$0xff]  }
  0x65   :  { %241 = vmatpush1.bf16.msra.mxu0 %v1659_v6  ;;  %704 = vmatpush1.bf16.msra.mxu1 %v1686_v15  ;;  %v1699_v24 = vld [vmem:[#allocation8 + $0x84] ss:$16 sps:$4 sm:$0xff]   ;;  %v1704_v29 = vld [vmem:[#allocation8 + $0x80] ss:$16 sps:$4 sm:$0xff]   ;;  %v1685_v33 = vld [vmem:[#allocation8 + $0x2c] ss:$16 sps:$4 sm:$0xff]  }
  0x66   :  { %242 = vmatprep.subr.bf16.mxu0 %v1660_v7  ;;  %705 = vmatprep.subr.bf16.mxu1 %v1687_v16  ;;  %v122_v26 = vld [vmem:[#allocation3] sm:$0xff]  ;;  %v125_v37 = vld [vmem:[#allocation3 + $0x18] sm:$0xff]  ;;  %s1416_s18 = sshll.u32 %s1963_s16, 4  ;;  %s1417_s18 = int_to_ptr.vmem [resolvable:$true] %s1416_s18 }
  0x67   :  { %v1705_v30 = vld [vmem:[#allocation8 + $0xa4] ss:$16 sps:$4 sm:$0xff]   ;;  %v126_v31 = vpack.c.bf16 %v123_v27, %v122_v26  ;;  %v1710_v34 = vld [vmem:[#allocation8 + $0xa0] ss:$16 sps:$4 sm:$0xff]   ;;  %v1691_v39 = vld [vmem:[#allocation8 + $0x4c] ss:$16 sps:$4 sm:$0xff]   ;;  %v127_v42 = vpack.c.bf16 %v125_v37, %v124_v36  ;;  %p1926_p13 = scmp.lt.s32.totalorder %s1417_s18, %s1417_s18 }
  0x68   :  { %v1711_v35 = vld [vmem:[#allocation8 + $0xc4] ss:$16 sps:$4 sm:$0xff]   ;;  %v1716_v40 = vld [vmem:[#allocation8 + $0xc0] ss:$16 sps:$4 sm:$0xff]   ;;  %v1689_v43 = vld [vmem:[#allocation8 + $0x48] ss:$16 sps:$4 sm:$0xff]  }
  0x69   :  { %243 = vmatpush1.bf16.msra.mxu0 %v1662_v8  ;;  %706 = vmatpush1.bf16.msra.mxu1 %v1692_v19  ;;  %v1717_v41 = vld [vmem:[#allocation8 + $0xe4] ss:$16 sps:$4 sm:$0xff]   ;;  %v1697_v44 = vld [vmem:[#allocation8 + $0x6c] ss:$16 sps:$4 sm:$0xff]   ;;  %v1722_v45 = vld [vmem:[#allocation8 + $0xe0] ss:$16 sps:$4 sm:$0xff]  }
  0x6a   :  { %244 = vmatprep.subr.bf16.mxu0 %v1663_v9  ;;  %707 = vmatprep.subr.bf16.mxu1 %v1693_v20  ;;  %v1723_v46 = vld [vmem:[#allocation8 + $0x104] ss:$16 sps:$4 sm:$0xff]   ;;  %v1695_v47 = vld [vmem:[#allocation8 + $0x68] ss:$16 sps:$4 sm:$0xff]   ;;  %v1703_v48 = vld [vmem:[#allocation8 + $0x8c] ss:$16 sps:$4 sm:$0xff]  }
  0x6b   :  { %v1728_v49 = vld [vmem:[#allocation8 + $0x100] ss:$16 sps:$4 sm:$0xff]   ;;  %v1729_v50 = vld [vmem:[#allocation8 + $0x124] ss:$16 sps:$4 sm:$0xff]   ;;  %v1701_v51 = vld [vmem:[#allocation8 + $0x88] ss:$16 sps:$4 sm:$0xff]  }
  0x6c   :  { %v1709_v52 = vld [vmem:[#allocation8 + $0xac] ss:$16 sps:$4 sm:$0xff]   ;;  %v1734_v53 = vld [vmem:[#allocation8 + $0x120] ss:$16 sps:$4 sm:$0xff]   ;;  %v1707_v54 = vld [vmem:[#allocation8 + $0xa8] ss:$16 sps:$4 sm:$0xff]  }
  0x6d   :  { %245 = vmatpush1.bf16.msra.mxu0 %v1665_v11  ;;  %708 = vmatpush1.bf16.msra.mxu1 %v1698_v23  ;;  %v1735_v55 = vld [vmem:[#allocation8 + $0x144] ss:$16 sps:$4 sm:$0xff]   ;;  %v1715_v56 = vld [vmem:[#allocation8 + $0xcc] ss:$16 sps:$4 sm:$0xff]   ;;  %v1740_v57 = vld [vmem:[#allocation8 + $0x140] ss:$16 sps:$4 sm:$0xff]  }
  0x6e   :  { %246 = vmatprep.subr.bf16.mxu0 %v1666_v14  ;;  %709 = vmatprep.subr.bf16.mxu1 %v1699_v24  ;;  %v1741_v58 = vld [vmem:[#allocation8 + $0x164] ss:$16 sps:$4 sm:$0xff]   ;;  %v1713_v59 = vld [vmem:[#allocation8 + $0xc8] ss:$16 sps:$4 sm:$0xff]   ;;  %v1721_v60 = vld [vmem:[#allocation8 + $0xec] ss:$16 sps:$4 sm:$0xff]  }
  0x6f   :  { %v1746_v61 = vld [vmem:[#allocation8 + $0x160] ss:$16 sps:$4 sm:$0xff]   ;;  %v1747_v62 = vld [vmem:[#allocation8 + $0x184] ss:$16 sps:$4 sm:$0xff]   ;;  %v1719_v63 = vld [vmem:[#allocation8 + $0xe8] ss:$16 sps:$4 sm:$0xff]  }
  0x70   :  { %v1752_v1 = vld [vmem:[#allocation8 + $0x180] ss:$16 sps:$4 sm:$0xff]   ;;  %v1753_v2 = vld [vmem:[#allocation8 + $0x1a4] ss:$16 sps:$4 sm:$0xff]   ;;  %v1725_v3 = vld [vmem:[#allocation8 + $0x108] ss:$16 sps:$4 sm:$0xff]  }
  0x71   :  { %247 = vmatpush1.bf16.msra.mxu0 %v1668_v17  ;;  %710 = vmatpush1.bf16.msra.mxu1 %v1704_v29  ;;  %v1733_v4 = vld [vmem:[#allocation8 + $0x12c] ss:$16 sps:$4 sm:$0xff]   ;;  %v1731_v5 = vld [vmem:[#allocation8 + $0x128] ss:$16 sps:$4 sm:$0xff]   ;;  %v1758_v14 = vld [vmem:[#allocation8 + $0x1a0] ss:$16 sps:$4 sm:$0xff]  }
  0x72   :  { %248 = vmatprep.subr.bf16.mxu0 %v1669_v18  ;;  %711 = vmatprep.subr.bf16.mxu1 %v1705_v30  ;;  %v1739_v6 = vld [vmem:[#allocation8 + $0x14c] ss:$16 sps:$4 sm:$0xff]   ;;  %v1737_v7 = vld [vmem:[#allocation8 + $0x148] ss:$16 sps:$4 sm:$0xff]   ;;  %v1759_v15 = vld [vmem:[#allocation8 + $0x1c4] ss:$16 sps:$4 sm:$0xff]  }
  0x73   :  { %v1745_v8 = vld [vmem:[#allocation8 + $0x16c] ss:$16 sps:$4 sm:$0xff]   ;;  %v1743_v9 = vld [vmem:[#allocation8 + $0x168] ss:$16 sps:$4 sm:$0xff]   ;;  %v1764_v18 = vld [vmem:[#allocation8 + $0x1c0] ss:$16 sps:$4 sm:$0xff]  }
  0x74   :  { %v1751_v10 = vld [vmem:[#allocation8 + $0x18c] ss:$16 sps:$4 sm:$0xff]   ;;  %v1749_v11 = vld [vmem:[#allocation8 + $0x188] ss:$16 sps:$4 sm:$0xff]   ;;  %v1765_v19 = vld [vmem:[#allocation8 + $0x1e4] ss:$16 sps:$4 sm:$0xff]  }
  0x75   :  { %249 = vmatpush1.bf16.msra.mxu0 %v1671_v21  ;;  %712 = vmatpush1.bf16.msra.mxu1 %v1710_v34  ;;  %v1757_v12 = vld [vmem:[#allocation8 + $0x1ac] ss:$16 sps:$4 sm:$0xff]   ;;  %v1755_v13 = vld [vmem:[#allocation8 + $0x1a8] ss:$16 sps:$4 sm:$0xff]   ;;  %v1771_v23 = vld [vmem:[#allocation9 + $0x40] sm:$0xff]   ;;  %s1921_s20 = scalar_lea.vmem %s1417_s18, 512 }
  0x76   :  { %250 = vmatprep.subr.bf16.mxu0 %v1672_v22  ;;  %713 = vmatprep.subr.bf16.mxu1 %v1711_v35  ;;  %v1763_v16 = vld [vmem:[#allocation8 + $0x1cc] ss:$16 sps:$4 sm:$0xff]   ;;  %v1761_v17 = vld [vmem:[#allocation8 + $0x1c8] ss:$16 sps:$4 sm:$0xff]   ;;  %v1770_v22 = vld [vmem:[#allocation8 + $0x1e0] ss:$16 sps:$4 sm:$0xff]   ;;  %p1922_p12 = scmp.ne.s32.totalorder %s1417_s18, %s1921_s20  ;;  %p1927_p0 = scmp.lt.s32.totalorder %s1921_s20, %s1921_s20 }
  0x77   :  { %v1769_v20 = vld [vmem:[#allocation8 + $0x1ec] ss:$16 sps:$4 sm:$0xff]   ;;  %v1767_v21 = vld [vmem:[#allocation8 + $0x1e8] ss:$16 sps:$4 sm:$0xff]   ;;  %v1772_v24 = vld [vmem:[#allocation9 + $0xc0] sm:$0xff]  }
  0x78   :  { %p1928_p1 = por %p1927_p0, %p1926_p13 }
  0x79   :  { %251 = vmatpush1.bf16.msra.mxu0 %v1674_v25  ;;  %714 = vmatpush1.bf16.msra.mxu1 %v1716_v40  ;;  %v146_v25 = vlaneseq }
  0x7a   :  { %754 = vmatprep.subr.bf16.mxu0 %v1679_v28  ;;  %715 = vmatprep.subr.bf16.mxu1 %v1717_v41  ;;  %v144_v28 = vld [vmem:[%s2145_s2] sm:$0x3]  ;;  %p1929_p2 = pnand %p1928_p1, %p1922_p12 }
  0x7b   :  { %v2102_v26 = vshrl.u32 %v146_v25, 7  ;;  %v1802_v25 = vld [vmem:[#allocation9 + $0xb8] sm:$0xff]  }
  0x7c   :  { %269 = vmatmul.mubr.bf16.vlgmr.msra.gmra.mrb[0].mxu0 %v126_v31 }
  0x7d   :  { %278 = vmatprep.mubr.bf16.mxu0 %v1962_v0  ;;  %755 = vmatpush1.bf16.msra.mxu0 %v1677_v32  ;;  %v1727_v0 = vld [vmem:[#allocation8 + $0x10c] ss:$16 sps:$4 sm:$0xff]   ;;  %v148_v27 = vsub.s32 0, %v2102_v26  ;;  %v152_v29 = vsub.s32 1, %v2102_v26 }
  0x7e   :  { %756 = vmatprep.subr.bf16.mxu0 %v1685_v33  ;;  %716 = vmatpush1.bf16.msra.mxu1 %v1722_v45 }
  0x7f   :  { %717 = vmatprep.subr.bf16.mxu1 %v1723_v46  ;;  %v149_v30 = vrot.slane %v144_v28, %v148_v27  ;;  %v153_v31 = vrot.slane %v144_v28, %v152_v29  ;;  %v1803_v28 = vld [vmem:[#allocation11] sm:$0xff]  }
  0x81   :  { %757 = vmatpush1.bf16.msra.mxu0 %v1683_v38 }
  0x82   :  { %758 = vmatprep.subr.bf16.mxu0 %v1691_v39  ;;  %718 = vmatpush1.bf16.msra.mxu1 %v1728_v49 }
  0x83   :  { %719 = vmatprep.subr.bf16.mxu1 %v1729_v50 }
  0x84   :  { %279 = vmatmul.mubr.bf16.gmra.mrb[4].mxu0 %v127_v42 }
  0x85   :  { %759 = vmatpush1.bf16.msra.mxu0 %v1689_v43 }
  0x86   :  { %760 = vmatprep.subr.bf16.mxu0 %v1697_v44  ;;  %720 = vmatpush1.bf16.msra.mxu1 %v1734_v53 }
  0x87   :  { %721 = vmatprep.subr.bf16.mxu1 %v1735_v55 }
  0x89   :  { %761 = vmatpush1.bf16.msra.mxu0 %v1695_v47  ;;  %v1773_v47 = vld [vmem:[#allocation9] sm:$0xff]  }
  0x8a   :  { %762 = vmatprep.subr.bf16.mxu0 %v1703_v48  ;;  %722 = vmatpush1.bf16.msra.mxu1 %v1740_v57  ;;  %v1774_v48 = vld [vmem:[#allocation9 + $0x80] sm:$0xff]  }
  0x8b   :  { %723 = vmatprep.subr.bf16.mxu1 %v1741_v58  ;;  %v1777_v58 = vld [vmem:[#allocation9 + $0x8] sm:$0xff]  }
  0x8d   :  { %763 = vmatpush1.bf16.msra.mxu0 %v1701_v51  ;;  %v1775_v51 = vld [vmem:[#allocation9 + $0x48] sm:$0xff]  }
  0x8e   :  { %764 = vmatprep.subr.bf16.mxu0 %v1709_v52  ;;  %724 = vmatpush1.bf16.msra.mxu1 %v1746_v61  ;;  %v1776_v52 = vld [vmem:[#allocation9 + $0xc8] sm:$0xff]  }
  0x8f   :  { %725 = vmatprep.subr.bf16.mxu1 %v1747_v62  ;;  %v1779_v62 = vld [vmem:[#allocation9 + $0x50] sm:$0xff]  }
  0x91   :  { %765 = vmatpush1.bf16.msra.mxu0 %v1707_v54 }
  0x92   :  { %766 = vmatprep.subr.bf16.mxu0 %v1715_v56  ;;  %726 = vmatpush1.bf16.msra.mxu1 %v1752_v1 }
  0x93   :  { %727 = vmatprep.subr.bf16.mxu1 %v1753_v2 }
  0x95   :  { %767 = vmatpush1.bf16.msra.mxu0 %v1713_v59  ;;  %v1778_v59 = vld [vmem:[#allocation9 + $0x88] sm:$0xff]  }
  0x96   :  { %768 = vmatprep.subr.bf16.mxu0 %v1721_v60  ;;  %728 = vmatpush1.bf16.msra.mxu1 %v1758_v14  ;;  %v1791_v14 = vld [vmem:[#allocation9 + $0x68] sm:$0xff]  }
  0x97   :  { %729 = vmatprep.subr.bf16.mxu1 %v1759_v15  ;;  %v1792_v15 = vld [vmem:[#allocation9 + $0xe8] sm:$0xff]  }
  0x99   :  { %769 = vmatpush1.bf16.msra.mxu0 %v1719_v63  ;;  %v1780_v63 = vld [vmem:[#allocation9 + $0xd0] sm:$0xff]  }
  0x9a   :  { %770 = vmatprep.subr.bf16.mxu0 %v1727_v0  ;;  %730 = vmatpush1.bf16.msra.mxu1 %v1764_v18  ;;  %v1795_v18 = vld [vmem:[#allocation9 + $0x70] sm:$0xff]  }
  0x9b   :  { %731 = vmatprep.subr.bf16.mxu1 %v1765_v19  ;;  %v1796_v19 = vld [vmem:[#allocation9 + $0xf0] sm:$0xff]  }
  0x9d   :  { %771 = vmatpush1.bf16.msra.mxu0 %v1725_v3 }
  0x9e   :  { %772 = vmatprep.subr.bf16.mxu0 %v1733_v4  ;;  %732 = vmatpush1.bf16.msra.mxu1 %v1770_v22  ;;  %v1781_v4 = vld [vmem:[#allocation9 + $0x10] sm:$0xff]   ;;  %v1799_v22 = vld [vmem:[#allocation9 + $0x78] sm:$0xff]  }
  0x9f   :  { %1552 = vmatprep.subr.bf16.mxu1 %v1771_v23  ;;  %v1800_v23 = vld [vmem:[#allocation9 + $0xf8] sm:$0xff]  }
  0xa1   :  { %773 = vmatpush1.bf16.msra.mxu0 %v1731_v5  ;;  %v1782_v5 = vld [vmem:[#allocation9 + $0x90] sm:$0xff]  }
  0xa2   :  { %774 = vmatprep.subr.bf16.mxu0 %v1739_v6  ;;  %v1783_v6 = vld [vmem:[#allocation9 + $0x58] sm:$0xff]  }
  0xa5   :  { %775 = vmatpush1.bf16.msra.mxu0 %v1737_v7  ;;  %v1784_v7 = vld [vmem:[#allocation9 + $0xd8] sm:$0xff]  }
  0xa6   :  { %776 = vmatprep.subr.bf16.mxu0 %v1745_v8  ;;  %v1785_v8 = vld [vmem:[#allocation9 + $0x18] sm:$0xff]  }
  0xa9   :  { %777 = vmatpush1.bf16.msra.mxu0 %v1743_v9  ;;  %v1786_v9 = vld [vmem:[#allocation9 + $0x98] sm:$0xff]  }
  0xaa   :  { %778 = vmatprep.subr.bf16.mxu0 %v1751_v10  ;;  %v1787_v10 = vld [vmem:[#allocation9 + $0x60] sm:$0xff]  }
  0xad   :  { %779 = vmatpush1.bf16.msra.mxu0 %v1749_v11  ;;  %v1788_v11 = vld [vmem:[#allocation9 + $0xe0] sm:$0xff]  }
  0xae   :  { %780 = vmatprep.subr.bf16.mxu0 %v1757_v12  ;;  %v1789_v12 = vld [vmem:[#allocation9 + $0x20] sm:$0xff]  }
  0xb1   :  { %781 = vmatpush1.bf16.msra.mxu0 %v1755_v13  ;;  %v1790_v13 = vld [vmem:[#allocation9 + $0xa0] sm:$0xff]  }
  0xb2   :  { %782 = vmatprep.subr.bf16.mxu0 %v1763_v16  ;;  %v1793_v16 = vld [vmem:[#allocation9 + $0x28] sm:$0xff]  }
  0xb5   :  { %783 = vmatpush1.bf16.msra.mxu0 %v1761_v17  ;;  %v1794_v17 = vld [vmem:[#allocation9 + $0xa8] sm:$0xff]  }
  0xb6   :  { %784 = vmatprep.subr.bf16.mxu0 %v1769_v20  ;;  %v1797_v20 = vld [vmem:[#allocation9 + $0x30] sm:$0xff]  }
  0xb9   :  { %785 = vmatpush1.bf16.msra.mxu0 %v1767_v21  ;;  %v1798_v21 = vld [vmem:[#allocation9 + $0xb0] sm:$0xff]  }
  0xba   :  { %1580 = vmatprep.subr.bf16.mxu0 %v1772_v24  ;;  %v1801_v24 = vld [vmem:[#allocation9 + $0x38] sm:$0xff]  }
 0x14f   :  { %v270_v32 = vpop.f32.mrb[0].mxu0 }
 0x150   :  { %v271_v33 = vadd.f32 %v270_v32, %v149_v30  ;;  %v272_v34 = vpop.f32.mrb[1].mxu0  ;;  %v874_v32 = vsub.s32 3, %v2102_v26 }
 0x151   :  { %v273_v35 = vadd.f32 %v272_v34, %v153_v31  ;;  %v274_v36 = vpop.f32.mrb[2].mxu0 }
 0x152   :  { %v275_v37 = vadd.f32 %v274_v36, %v149_v30  ;;  %v276_v38 = vpop.f32.mrb[3].mxu0  ;;  %v289_v40 = vmax.f32 %v271_v33, 0.0 }
 0x153   :  { %v277_v39 = vadd.f32 %v276_v38, %v153_v31  ;;  %v290_v42 = vmax.f32 %v273_v35, 0.0 }
 0x154   :  { %v291_v41 = vmax.f32 %v275_v37, 0.0 }
 0x155   :  { %v292_v43 = vmax.f32 %v277_v39, 0.0 }
 0x156   :  { %v297_v44 = vpack.c.bf16 %v291_v41, %v289_v40 }
 0x157   :  { %v280_v45 = vpop.f32.mrb[4].mxu0  ;;  %v298_v46 = vpack.c.bf16 %v292_v43, %v290_v42 }
 0x158   :  { %v281_v49 = vadd.f32 %v280_v45, %v149_v30  ;;  %v282_v50 = vpop.f32.mrb[5].mxu0 }
 0x159   :  { %v283_v53 = vadd.f32 %v282_v50, %v153_v31  ;;  %v284_v54 = vpop.f32.mrb[6].mxu0  ;;  %733 = vmatprep.mubr.bf16.mxu1 %v298_v46  ;;  %786 = vmatprep.mubr.bf16.mxu0 %v298_v46 }
 0x15a   :  { %v285_v55 = vadd.f32 %v284_v54, %v149_v30  ;;  %v286_v56 = vpop.f32.mrb[7].mxu0  ;;  %734 = vmatmul.mubr.bf16.vlgmr.msra.gmra.mrb[0].mxu1 %v297_v44  ;;  %787 = vmatmul.mubr.bf16.vlgmr.msra.gmra.mrb[8].mxu0 %v297_v44  ;;  %v293_v60 = vmax.f32 %v281_v49, 0.0  ;;  %v870_v30 = vsub.s32 2, %v2102_v26 }
 0x15b   :  { %v287_v57 = vadd.f32 %v286_v56, %v153_v31  ;;  %1553 = vmatpush3.bf16.msra.mxu1 %v1773_v47  ;;  %1581 = vmatpush3.bf16.msra.mxu0 %v1774_v48  ;;  %v294_v0 = vmax.f32 %v283_v53, 0.0  ;;  %v858_v31 = vld [vmem:[%s2147_s4] sm:$0xf] }
 0x15c   :  { %v295_v61 = vmax.f32 %v285_v55, 0.0  ;;  %1554 = vmatprep.subr.bf16.mxu1 %v1775_v51  ;;  %1582 = vmatprep.subr.bf16.mxu0 %v1776_v52  ;;  %v863_v33 = vrot.slane %v858_v31, %v148_v27  ;;  %v871_v34 = vrot.slane %v858_v31, %v870_v30  ;;  %v867_v35 = vrot.slane %v858_v31, %v152_v29 }
 0x15d   :  { %v296_v1 = vmax.f32 %v287_v57, 0.0  ;;  %v875_v36 = vrot.slane %v858_v31, %v874_v32  ;;  %v1807_v32 = vld [vmem:[#allocation11 + $0x20] sm:$0xff]  }
 0x15e   :  { %v299_v2 = vpack.c.bf16 %v295_v61, %v293_v60 }
 0x15f   :  { %v300_v3 = vpack.c.bf16 %v296_v1, %v294_v0  ;;  %1555 = vmatpush3.bf16.msra.mxu1 %v1777_v58  ;;  %1583 = vmatpush3.bf16.msra.mxu0 %v1778_v59 }
 0x160   :  { %1556 = vmatprep.subr.bf16.mxu1 %v1779_v62  ;;  %1584 = vmatprep.subr.bf16.mxu0 %v1780_v63 }
 0x161   :  { %743 = vmatprep.mubr.bf16.mxu1 %v300_v3  ;;  %796 = vmatprep.mubr.bf16.mxu0 %v300_v3 }
 0x162   :  { %744 = vmatmul.mubr.bf16.gmra.mrb[4].mxu1 %v299_v2  ;;  %797 = vmatmul.mubr.bf16.gmra.mrb[12].mxu0 %v299_v2 }
 0x163   :  { %1557 = vmatpush3.bf16.msra.mxu1 %v1781_v4  ;;  %1585 = vmatpush3.bf16.msra.mxu0 %v1782_v5  ;;  %v1804_v4 = vld [vmem:[#allocation11 + $0x8] sm:$0xff]  }
 0x164   :  { %1558 = vmatprep.subr.bf16.mxu1 %v1783_v6  ;;  %1586 = vmatprep.subr.bf16.mxu0 %v1784_v7 }
 0x167   :  { %1559 = vmatpush3.bf16.msra.mxu1 %v1785_v8  ;;  %1587 = vmatpush3.bf16.msra.mxu0 %v1786_v9 }
 0x168   :  { %1560 = vmatprep.subr.bf16.mxu1 %v1787_v10  ;;  %1588 = vmatprep.subr.bf16.mxu0 %v1788_v11 }
 0x16b   :  { %1561 = vmatpush3.bf16.msra.mxu1 %v1789_v12  ;;  %1589 = vmatpush3.bf16.msra.mxu0 %v1790_v13 }
 0x16c   :  { %1562 = vmatprep.subr.bf16.mxu1 %v1791_v14  ;;  %1590 = vmatprep.subr.bf16.mxu0 %v1792_v15 }
 0x16f   :  { %1563 = vmatpush3.bf16.msra.mxu1 %v1793_v16  ;;  %1591 = vmatpush3.bf16.msra.mxu0 %v1794_v17 }
 0x170   :  { %1564 = vmatprep.subr.bf16.mxu1 %v1795_v18  ;;  %1592 = vmatprep.subr.bf16.mxu0 %v1796_v19  ;;  %v1805_v19 = vld [vmem:[#allocation11 + $0x10] sm:$0xff]  }
 0x173   :  { %1565 = vmatpush3.bf16.msra.mxu1 %v1797_v20  ;;  %1593 = vmatpush3.bf16.msra.mxu0 %v1798_v21 }
 0x174   :  { %1566 = vmatprep.subr.bf16.mxu1 %v1799_v22  ;;  %1594 = vmatprep.subr.bf16.mxu0 %v1800_v23 }
 0x177   :  { %1567 = vmatpush3.bf16.msra.mxu1 %v1801_v24  ;;  %1595 = vmatpush3.bf16.msra.mxu0 %v1802_v25 }
 0x178   :  { %1618 = vmatprep.subr.bf16.mxu1 %v1803_v28 }
 0x22d   :  { %v735_v37 = vpop.f32.mrb[0].mxu1  ;;  %v788_v38 = vpop.f32.mrb[8].mxu0 }
 0x22e   :  { %v880_v39 = vadd.f32 %v863_v33, %v735_v37  ;;  %v882_v40 = vadd.f32 %v871_v34, %v788_v38  ;;  %v737_v41 = vpop.f32.mrb[1].mxu1  ;;  %v790_v42 = vpop.f32.mrb[9].mxu0  ;;  %v1510_v38 = vld [vmem:[%s2149_s6] ss:$0 sm:$0xff] }
 0x22f   :  { %v881_v43 = vadd.f32 %v867_v35, %v737_v41  ;;  %v883_v44 = vadd.f32 %v875_v36, %v790_v42  ;;  %v739_v45 = vpop.f32.mrb[2].mxu1  ;;  %v792_v46 = vpop.f32.mrb[10].mxu0 }
 0x230   :  { %v884_v47 = vadd.f32 %v863_v33, %v739_v45  ;;  %v886_v48 = vadd.f32 %v871_v34, %v792_v46  ;;  %v741_v49 = vpop.f32.mrb[3].mxu1  ;;  %v794_v50 = vpop.f32.mrb[11].mxu0  ;;  %v896_v52 = vmax.f32 %v880_v39, 0.0  ;;  %v898_v26 = vmax.f32 %v882_v40, 0.0 }
 0x231   :  { %v885_v27 = vadd.f32 %v867_v35, %v741_v49  ;;  %v887_v51 = vadd.f32 %v875_v36, %v794_v50  ;;  %v897_v54 = vmax.f32 %v881_v43, 0.0  ;;  %v899_v55 = vmax.f32 %v883_v44, 0.0 }
 0x232   :  { %v900_v29 = vmax.f32 %v884_v47, 0.0  ;;  %v902_v53 = vmax.f32 %v886_v48, 0.0 }
 0x233   :  { %v901_v56 = vmax.f32 %v885_v27, 0.0  ;;  %v903_v57 = vmax.f32 %v887_v51, 0.0 }
 0x234   :  { %v912_v58 = vpack.c.bf16 %v900_v29, %v896_v52  ;;  %v914_v59 = vpack.c.bf16 %v902_v53, %v898_v26 }
 0x235   :  { %v913_v60 = vpack.c.bf16 %v901_v56, %v897_v54  ;;  %v915_v61 = vpack.c.bf16 %v903_v57, %v899_v55  ;;  %v745_v62 = vpop.f32.mrb[4].mxu1  ;;  %v798_v63 = vpop.f32.mrb[12].mxu0 }
 0x236   :  { %v888_v0 = vadd.f32 %v863_v33, %v745_v62  ;;  %v890_v1 = vadd.f32 %v871_v34, %v798_v63  ;;  %v747_v2 = vpop.f32.mrb[5].mxu1  ;;  %v800_v3 = vpop.f32.mrb[13].mxu0 }
 0x237   :  { %v889_v5 = vadd.f32 %v867_v35, %v747_v2  ;;  %v891_v6 = vadd.f32 %v875_v36, %v800_v3  ;;  %v749_v7 = vpop.f32.mrb[6].mxu1  ;;  %v802_v8 = vpop.f32.mrb[14].mxu0  ;;  %1215 = vmatprep.mubr.bf16.mxu1 %v913_v60  ;;  %1264 = vmatprep.mubr.bf16.mxu0 %v915_v61 }
 0x238   :  { %v892_v9 = vadd.f32 %v863_v33, %v749_v7  ;;  %v894_v10 = vadd.f32 %v871_v34, %v802_v8  ;;  %v751_v11 = vpop.f32.mrb[7].mxu1  ;;  %v804_v12 = vpop.f32.mrb[15].mxu0  ;;  %1216 = vmatmul.mubr.bf16.vlgmr.msra.gmra.mrb[8].mxu1 %v912_v58  ;;  %1265 = vmatmul.mubr.bf16.vlgmr.msra.gmra.mrb[16].mxu0 %v914_v59  ;;  %v904_v15 = vmax.f32 %v888_v0, 0.0  ;;  %v906_v16 = vmax.f32 %v890_v1, 0.0  ;;  %v1808_v33 = vld [vmem:[#allocation11 + $0x28] sm:$0xff]   ;;  %v1809_v34 = vld [vmem:[#allocation11 + $0x30] sm:$0xff]  }
 0x239   :  { %v893_v13 = vadd.f32 %v867_v35, %v751_v11  ;;  %v895_v14 = vadd.f32 %v875_v36, %v804_v12  ;;  %1619 = vmatpush3.bf16.msra.mxu1 %v1803_v28  ;;  %v905_v20 = vmax.f32 %v889_v5, 0.0  ;;  %v907_v21 = vmax.f32 %v891_v6, 0.0  ;;  %v1806_v28 = vld [vmem:[#allocation11 + $0x18] sm:$0xff]   ;;  %v1543_v8 = vld [vmem:[%s2151_s8] ss:$0 sm:$0xff] }
 0x23a   :  { %v908_v17 = vmax.f32 %v892_v9, 0.0  ;;  %v910_v18 = vmax.f32 %v894_v10, 0.0  ;;  %1620 = vmatprep.subr.bf16.mxu1 %v1804_v4  ;;  %v1810_v35 = vld [vmem:[#allocation11 + $0x38] sm:$0xff]  }
 0x23b   :  { %v909_v22 = vmax.f32 %v893_v13, 0.0  ;;  %v911_v23 = vmax.f32 %v895_v14, 0.0 }
 0x23c   :  { %v916_v24 = vpack.c.bf16 %v908_v17, %v904_v15  ;;  %v918_v25 = vpack.c.bf16 %v910_v18, %v906_v16 }
 0x23d   :  { %v917_v30 = vpack.c.bf16 %v909_v22, %v905_v20  ;;  %v919_v31 = vpack.c.bf16 %v911_v23, %v907_v21  ;;  %1621 = vmatpush3.bf16.msra.mxu1 %v1804_v4 }
 0x23e   :  { %1622 = vmatprep.subr.bf16.mxu1 %v1805_v19 }
 0x23f   :  { %1223 = vmatprep.mubr.bf16.mxu1 %v917_v30  ;;  %1272 = vmatprep.mubr.bf16.mxu0 %v919_v31 }
 0x240   :  { %1224 = vmatmul.mubr.bf16.gmra.mrb[12].mxu1 %v916_v24  ;;  %1273 = vmatmul.mubr.bf16.gmra.mrb[20].mxu0 %v918_v25 }
 0x241   :  { %1623 = vmatpush3.bf16.msra.mxu1 %v1805_v19 }
 0x242   :  { %1624 = vmatprep.subr.bf16.mxu1 %v1806_v28 }
 0x245   :  { %1625 = vmatpush3.bf16.msra.mxu1 %v1806_v28 }
 0x246   :  { %1626 = vmatprep.subr.bf16.mxu1 %v1807_v32 }
 0x249   :  { %1627 = vmatpush3.bf16.msra.mxu1 %v1807_v32 }
 0x24a   :  { %1628 = vmatprep.subr.bf16.mxu1 %v1808_v33 }
 0x24d   :  { %1629 = vmatpush3.bf16.msra.mxu1 %v1808_v33 }
 0x24e   :  { %1630 = vmatprep.subr.bf16.mxu1 %v1809_v34 }
 0x251   :  { %1631 = vmatpush3.bf16.msra.mxu1 %v1809_v34 }
 0x252   :  { %1632 = vmatprep.subr.bf16.mxu1 %v1810_v35 }
 0x255   :  { %1633 = vmatpush3.bf16.msra.mxu1 %v1810_v35 }
 0x30b   :  { %v1568_v36 = vpop.f32.mrb[8].mxu1  ;;  %v1596_v37 = vpop.f32.mrb[16].mxu0 }
 0x30c   :  { %v1569_v39 = vpop.f32.mrb[9].mxu1  ;;  %v1597_v40 = vpop.f32.mrb[17].mxu0 }
 0x30d   :  { %v1570_v41 = vadd.f32 %v1569_v39, %v1568_v36  ;;  %v1598_v42 = vadd.f32 %v1597_v40, %v1596_v37  ;;  %v1571_v43 = vpop.f32.mrb[10].mxu1  ;;  %v1599_v44 = vpop.f32.mrb[18].mxu0 }
 0x30e   :  { %v1572_v45 = vpop.f32.mrb[11].mxu1  ;;  %v1600_v46 = vpop.f32.mrb[19].mxu0 }
 0x30f   :  { %v1218_v47 = vadd.f32 %v1570_v41, %v1510_v38  ;;  %v1573_v48 = vadd.f32 %v1572_v45, %v1571_v43  ;;  %v1601_v49 = vadd.f32 %v1600_v46, %v1599_v44 }
 0x311   :  { %v1267_v50 = vadd.f32 %v1598_v42, %v1218_v47  ;;  %v1221_v27 = vadd.f32 %v1573_v48, %v1510_v38 }
 0x313   :  { %v1270_v51 = vadd.f32 %v1601_v49, %v1221_v27  ;;  %v1574_v52 = vpop.f32.mrb[12].mxu1  ;;  %v1602_v26 = vpop.f32.mrb[20].mxu0  ;;  %v1281_v54 = vmax.f32 %v1267_v50, 0.0 }
 0x314   :  { %v1575_v29 = vpop.f32.mrb[13].mxu1  ;;  %v1603_v53 = vpop.f32.mrb[21].mxu0 }
 0x315   :  { %v1282_v55 = vmax.f32 %v1270_v51, 0.0  ;;  %v1576_v56 = vadd.f32 %v1575_v29, %v1574_v52  ;;  %v1604_v57 = vadd.f32 %v1603_v53, %v1602_v26  ;;  %v1577_v58 = vpop.f32.mrb[14].mxu1  ;;  %v1605_v59 = vpop.f32.mrb[22].mxu0 }
 0x316   :  { %v1578_v60 = vpop.f32.mrb[15].mxu1  ;;  %v1606_v61 = vpop.f32.mrb[23].mxu0 }
 0x317   :  { %v1226_v62 = vadd.f32 %v1576_v56, %v1510_v38  ;;  %v1579_v63 = vadd.f32 %v1578_v60, %v1577_v58  ;;  %v1607_v0 = vadd.f32 %v1606_v61, %v1605_v59  ;;  %v1285_v1 = vpack.c.bf16 %v1282_v55, %v1281_v54 }
 0x319   :  { %v1275_v2 = vadd.f32 %v1604_v57, %v1226_v62  ;;  %v1229_v3 = vadd.f32 %v1579_v63, %v1510_v38  ;;  %1634 = vmatprep.mubr.bf16.mxu1 %v1285_v1 }
 0x31b   :  { %v1278_v4 = vadd.f32 %v1607_v0, %v1229_v3  ;;  %v1283_v5 = vmax.f32 %v1275_v2, 0.0 }
 0x31d   :  { %v1284_v6 = vmax.f32 %v1278_v4, 0.0 }
 0x31f   :  { %v1286_v7 = vpack.c.bf16 %v1284_v6, %v1283_v5 }
 0x321   :  { %1635 = vmatmul.mubr.bf16.vlgmr.msra.gmra.mrb[16].mxu1 %v1286_v7 }
 0x3f4   :  { %v1636_v9 = vpop.f32.mrb[16].mxu1 }
 0x3f5   :  { %v1401_v10 = vadd.f32 %v1636_v9, %v1543_v8  ;;  %v1392_v11 = vpop.f32.mrb[17].mxu1 }
 0x3f6   :  { %v1393_v12 = vadd.f32 %v1543_v8, %v1392_v11  ;;  %v1637_v13 = vpop.f32.mrb[18].mxu1 }
 0x3f7   :  { %1409 = vst [vmem:[#allocation12 + $0x10] sm:$0xff] %v1401_v10  ;;  %v1404_v14 = vadd.f32 %v1637_v13, %v1543_v8  ;;  %v1395_v15 = vpop.f32.mrb[19].mxu1 }
 0x3f8   :  { %1407 = vst [vmem:[#allocation12] sm:$0xff] %v1393_v12  ;;  %v1396_v16 = vadd.f32 %v1543_v8, %v1395_v15 }
 0x3f9   :  { %1410 = vst [vmem:[#allocation12 + $0x18] sm:$0xff] %v1404_v14 }
 0x3fa   :  { %1408 = vst [vmem:[#allocation12 + $0x8] sm:$0xff] %v1396_v16 }
 0x3fb   :  { %1932 = shalt.err (!%p1929_p2)
}
 0x3fc   :  { %s1933_s17 = scalar_lea.hbm %s2152_s9, 512 }
 0x3fd   :  { %p1934_p3 = scmp.ne.s32.totalorder %s2152_s9, %s1933_s17  ;;  %p1937_p4 = scmp.lt.u32.totalorder %s1933_s17, %s2152_s9 }
 0x3ff   :  { %p1939_p5 = pnand %p1937_p4, %p1934_p3 }
 0x401   :  { %1942 = shalt.err (!%p1939_p5)
}
 0x402   :  { %1422 = dma.vmem_to_hbm [thread:$0]  %s1417_s18, 512, %s2152_s9, [#allocation5], %s1953_s21, %s1953_s21, %s1954_s22  }
 0x403   :  { %1949 = dma.done.wait [#allocation5], 512  }
 0x404   :  { %1950 = vsyncadd [#allocation5], 4294966784 }
 0x405   :  { %1426 = vsyncpa [#allocation4], 1 }
 0x406   :  { %1427 = vsyncpa [#allocation7], 1 }
 0x407   :  { %1428 = vsyncpa [#allocation10], 1 }
 0x408   :  { %1429 = vsyncpa [#allocation5], 1 }

// kernel: tpu_custom_call.1
= control target key start
LH: loop header
LB: loop body
LE: loop exit
PB: predicated region body
PF: predicated region fallthrough
CT: control target
= control target key end

     0   :  { %14 = vsyncpa [#allocation4], 0  ;;  %s2143_s0 = inlined_call_operand.hbm [shape: f32[32,128], index: 0, kind: input, shape index: {}]   ;;  %s2144_s1 = inlined_call_operand.hbm [shape: bf16[128,256], index: 1, kind: input, shape index: {}]   ;;  %s2145_s2 = inlined_call_operand.vmem [shape: f32[1,256], index: 2, kind: input, shape index: {}]   ;;  %s2146_s3 = inlined_call_operand.hbm [shape: bf16[256,512], index: 3, kind: input, shape index: {}]   ;;  %s2147_s4 = inlined_call_operand.vmem [shape: f32[1,512], index: 4, kind: input, shape index: {}]   ;;  %s2148_s5 = inlined_call_operand.hbm [shape: bf16[512,128], index: 5, kind: input, shape index: {}]   ;;  %s2149_s6 = inlined_call_operand.vmem [shape: f32[1,128], index: 6, kind: input, shape index: {}]   ;;  %s2150_s7 = inlined_call_operand.hbm [shape: bf16[128,128], index: 7, kind: input, shape index: {}]   ;;  %s2151_s8 = inlined_call_operand.vmem [shape: f32[1,128], index: 8, kind: input, shape index: {}]   ;;  %s2152_s9 = inlined_call_operand.hbm [shape: f32[32,128], index: 9, kind: output, shape index: {}]  }
   0x1   :  { %15 = vsyncpa [#allocation7], 0 }
   0x2   :  { %16 = vsyncpa [#allocation10], 0 }
   0x3   :  { %17 = vsyncpa [#allocation5], 0  ;;  %s1951_s30 = smov [#allocation6]   ;;  %s1952_s11 = smov [#allocation9]  }
   0x4   :  { %s35_s10 = sshll.u32 %s1951_s30, 4  ;;  %s63_s12 = sshll.u32 %s1952_s11, 4  ;;  %s36_s10 = int_to_ptr.vmem [resolvable:$true] %s35_s10  ;;  %s2014_s12 = int_to_ptr.vmem [resolvable:$true] %s63_s12 }
   0x5   :  { %s1811_s15 = scalar_lea.hbm %s2144_s1, 2048 }
   0x6   :  { %p1812_p0 = scmp.ne.s32.totalorder %s2144_s1, %s1811_s15  ;;  %p1815_p1 = scmp.lt.u32.totalorder %s1811_s15, %s2144_s1 }
   0x8   :  { %p1817_p2 = pnand %p1815_p1, %p1812_p0 }
   0xa   :  { %1820 = shalt.err (!%p1817_p2)
}
   0xb   :  { %s1821_s20 = scalar_lea.vmem %s36_s10, 2048  ;;  %p1826_p4 = scmp.lt.s32.totalorder %s36_s10, %s36_s10 }
   0xc   :  { %p1822_p3 = scmp.ne.s32.totalorder %s36_s10, %s1821_s20  ;;  %p1827_p5 = scmp.lt.s32.totalorder %s1821_s20, %s1821_s20 }
   0xe   :  { %p1828_p6 = por %p1827_p5, %p1826_p4 }
  0x10   :  { %p1829_p7 = pnand %p1828_p6, %p1822_p3 }
  0x12   :  { %1832 = shalt.err (!%p1829_p7)
}
  0x13   :  { %s1953_s21 = smov 128   ;;  %s1954_s22 = smov 8  }
  0x14   :  { %41 = dma.hbm_to_vmem [thread:$0]  %s2144_s1, 2048, %s36_s10, [#allocation7], %s1953_s21, %s1953_s21, %s1954_s22  }
  0x15   :  { %s1833_s27 = scalar_lea.hbm %s2148_s5, 4096 }
  0x16   :  { %p1834_p8 = scmp.ne.s32.totalorder %s2148_s5, %s1833_s27  ;;  %p1837_p9 = scmp.lt.u32.totalorder %s1833_s27, %s2148_s5 }
  0x18   :  { %p1839_p10 = pnand %p1837_p9, %p1834_p8 }
  0x1a   :  { %1842 = shalt.err (!%p1839_p10)
}
  0x1b   :  { %s1843_s13 = scalar_lea.vmem %s2014_s12, 4096  ;;  %p1848_p12 = scmp.lt.s32.totalorder %s2014_s12, %s2014_s12 }
  0x1c   :  { %p1844_p11 = scmp.ne.s32.totalorder %s2014_s12, %s1843_s13  ;;  %p1849_p13 = scmp.lt.s32.totalorder %s1843_s13, %s1843_s13 }
  0x1e   :  { %p1850_p0 = por %p1849_p13, %p1848_p12 }
  0x20   :  { %p1851_p1 = pnand %p1850_p0, %p1844_p11 }
  0x22   :  { %1854 = shalt.err (!%p1851_p1)
}
  0x23   :  { %s1955_s1 = smov 64   ;;  %s1956_s10 = smov 4  }
  0x24   :  { %69 = dma.hbm_to_vmem [thread:$0]  %s2148_s5, 4096, %s2014_s12, [#allocation10], %s1955_s1, %s1955_s1, %s1956_s10  }
  0x25   :  { %s1957_s16 = smov [#allocation3]   ;;  %s1958_s18 = smov [#allocation8]  }
  0x26   :  { %s23_s17 = sshll.u32 %s1957_s16, 4  ;;  %s49_s19 = sshll.u32 %s1958_s18, 4  ;;  %s24_s17 = int_to_ptr.vmem [resolvable:$true] %s23_s17  ;;  %s2051_s19 = int_to_ptr.vmem [resolvable:$true] %s49_s19 }
  0x27   :  { %s1855_s24 = scalar_lea.hbm %s2143_s0, 512 }
  0x28   :  { %p1856_p2 = scmp.ne.s32.totalorder %s2143_s0, %s1855_s24  ;;  %p1859_p3 = scmp.lt.u32.totalorder %s1855_s24, %s2143_s0 }
  0x2a   :  { %p1861_p4 = pnand %p1859_p3, %p1856_p2 }
  0x2c   :  { %1864 = shalt.err (!%p1861_p4)
}
  0x2d   :  { %s1865_s5 = scalar_lea.vmem %s24_s17, 512  ;;  %p1870_p6 = scmp.lt.s32.totalorder %s24_s17, %s24_s17 }
  0x2e   :  { %p1866_p5 = scmp.ne.s32.totalorder %s24_s17, %s1865_s5  ;;  %p1871_p7 = scmp.lt.s32.totalorder %s1865_s5, %s1865_s5 }
  0x30   :  { %p1872_p8 = por %p1871_p7, %p1870_p6 }
  0x32   :  { %p1873_p9 = pnand %p1872_p8, %p1866_p5 }
  0x34   :  { %1876 = shalt.err (!%p1873_p9)
}
  0x35   :  { %29 = dma.hbm_to_vmem [thread:$0]  %s2143_s0, 512, %s24_s17, [#allocation4], %s1953_s21, %s1953_s21, %s1954_s22  }
  0x36   :  { %s1877_s13 = scalar_lea.hbm %s2146_s3, 8192 }
  0x37   :  { %p1878_p10 = scmp.ne.s32.totalorder %s2146_s3, %s1877_s13  ;;  %p1881_p11 = scmp.lt.u32.totalorder %s1877_s13, %s2146_s3 }
  0x39   :  { %p1883_p12 = pnand %p1881_p11, %p1878_p10 }
  0x3b   :  { %1886 = shalt.err (!%p1883_p12)
}
  0x3c   :  { %s1887_s20 = scalar_lea.vmem %s2051_s19, 8192  ;;  %p1892_p0 = scmp.lt.s32.totalorder %s2051_s19, %s2051_s19 }
  0x3d   :  { %p1888_p13 = scmp.ne.s32.totalorder %s2051_s19, %s1887_s20  ;;  %p1893_p1 = scmp.lt.s32.totalorder %s1887_s20, %s1887_s20 }
  0x3f   :  { %p1894_p2 = por %p1893_p1, %p1892_p0 }
  0x41   :  { %p1895_p3 = pnand %p1894_p2, %p1888_p13 }
  0x43   :  { %1898 = shalt.err (!%p1895_p3)
}
  0x44   :  { %s1959_s0 = smov 256   ;;  %s1960_s17 = smov 16  }
  0x45   :  { %55 = dma.hbm_to_vmem [thread:$0]  %s2146_s3, 8192, %s2051_s19, [#allocation7], %s1959_s0, %s1959_s0, %s1960_s17  }
  0x46   :  { %s1961_s25 = smov [#allocation11]   ;;  %s1899_s5 = scalar_lea.hbm %s2150_s7, 1024 }
  0x47   :  { %s77_s26 = sshll.u32 %s1961_s25, 4  ;;  %p1900_p4 = scmp.ne.s32.totalorder %s2150_s7, %s1899_s5  ;;  %s78_s26 = int_to_ptr.vmem [resolvable:$true] %s77_s26 }
  0x48   :  { %p1903_p5 = scmp.lt.u32.totalorder %s1899_s5, %s2150_s7 }
  0x4a   :  { %p1905_p6 = pnand %p1903_p5, %p1900_p4 }
  0x4c   :  { %1908 = shalt.err (!%p1905_p6)
}
  0x4d   :  { %s1909_s13 = scalar_lea.vmem %s78_s26, 1024  ;;  %p1914_p8 = scmp.lt.s32.totalorder %s78_s26, %s78_s26 }
  0x4e   :  { %p1910_p7 = scmp.ne.s32.totalorder %s78_s26, %s1909_s13  ;;  %p1915_p9 = scmp.lt.s32.totalorder %s1909_s13, %s1909_s13 }
  0x50   :  { %p1916_p10 = por %p1915_p9, %p1914_p8 }
  0x52   :  { %p1917_p11 = pnand %p1916_p10, %p1910_p7 }
  0x54   :  { %1920 = shalt.err (!%p1917_p11)
}
  0x55   :  { %83 = dma.hbm_to_vmem [thread:$0]  %s2150_s7, 1024, %s78_s26, [#allocation10], %s1955_s1, %s1955_s1, %s1956_s10  }
  0x56   :  { %1943 = dma.done.wait [#allocation4], 512  }
  0x57   :  { %1944 = vsyncadd [#allocation4], 4294966784 }
  0x58   :  { %1945 = dma.done.wait [#allocation7], 10240  }
  0x59   :  { %1946 = vsyncadd [#allocation7], 4294957056 }
  0x5a   :  { %1947 = dma.done.wait [#allocation10], 5120  }
  0x5b   :  { %1948 = vsyncadd [#allocation10], 4294962176  ;;  %v1962_v0 = vmov 0   ;;  %v1651_v1 = vld [vmem:[#allocation6 + $0x4] ss:$8 sps:$4 sm:$0xff]   ;;  %v124_v36 = vld [vmem:[#allocation3 + $0x10] sm:$0xff] }
  0x5c   :  { %268 = vmatprep.mubr.bf16.mxu0 %v1962_v0  ;;  %v1653_v2 = vld [vmem:[#allocation6] ss:$8 sps:$4 sm:$0xff]   ;;  %236 = vmatprep.subr.bf16.mxu0 %v1651_v1  ;;  %v1654_v3 = vld [vmem:[#allocation6 + $0x14] ss:$8 sps:$4 sm:$0xff]   ;;  %v1656_v4 = vld [vmem:[#allocation6 + $0x10] ss:$8 sps:$4 sm:$0xff]  }
  0x5d   :  { %237 = vmatpush1.bf16.msra.mxu0 %v1653_v2  ;;  %v1657_v5 = vld [vmem:[#allocation6 + $0x24] ss:$8 sps:$4 sm:$0xff]   ;;  %v1659_v6 = vld [vmem:[#allocation6 + $0x20] ss:$8 sps:$4 sm:$0xff]   ;;  %v1660_v7 = vld [vmem:[#allocation6 + $0x34] ss:$8 sps:$4 sm:$0xff]  }
  0x5e   :  { %238 = vmatprep.subr.bf16.mxu0 %v1654_v3  ;;  %v1662_v8 = vld [vmem:[#allocation6 + $0x30] ss:$8 sps:$4 sm:$0xff]   ;;  %v1663_v9 = vld [vmem:[#allocation6 + $0x44] ss:$8 sps:$4 sm:$0xff]   ;;  %v1665_v11 = vld [vmem:[#allocation6 + $0x40] ss:$8 sps:$4 sm:$0xff]  }
  0x5f   :  { %v1675_v10 = vld [vmem:[#allocation8 + $0x4] ss:$16 sps:$4 sm:$0xff]   ;;  %v1680_v12 = vld [vmem:[#allocation8] ss:$16 sps:$4 sm:$0xff]   ;;  %v123_v27 = vld [vmem:[#allocation3 + $0x8] sm:$0xff]  ;;  %s1963_s16 = smov [#allocation12]  }
  0x60   :  { %701 = vmatprep.subr.bf16.mxu1 %v1675_v10  ;;  %v1681_v13 = vld [vmem:[#allocation8 + $0x24] ss:$16 sps:$4 sm:$0xff]   ;;  %v1686_v15 = vld [vmem:[#allocation8 + $0x20] ss:$16 sps:$4 sm:$0xff]   ;;  %v1679_v28 = vld [vmem:[#allocation8 + $0xc] ss:$16 sps:$4 sm:$0xff]  }
  0x61   :  { %239 = vmatpush1.bf16.msra.mxu0 %v1656_v4  ;;  %v1666_v14 = vld [vmem:[#allocation6 + $0x54] ss:$8 sps:$4 sm:$0xff]   ;;  %702 = vmatpush1.bf16.msra.mxu1 %v1680_v12  ;;  %v1668_v17 = vld [vmem:[#allocation6 + $0x50] ss:$8 sps:$4 sm:$0xff]   ;;  %v1669_v18 = vld [vmem:[#allocation6 + $0x64] ss:$8 sps:$4 sm:$0xff]  }
  0x62   :  { %240 = vmatprep.subr.bf16.mxu0 %v1657_v5  ;;  %703 = vmatprep.subr.bf16.mxu1 %v1681_v13  ;;  %v1687_v16 = vld [vmem:[#allocation8 + $0x44] ss:$16 sps:$4 sm:$0xff]   ;;  %v1692_v19 = vld [vmem:[#allocation8 + $0x40] ss:$16 sps:$4 sm:$0xff]   ;;  %v1677_v32 = vld [vmem:[#allocation8 + $0x8] ss:$16 sps:$4 sm:$0xff]  }
  0x63   :  { %v1693_v20 = vld [vmem:[#allocation8 + $0x64] ss:$16 sps:$4 sm:$0xff]   ;;  %v1671_v21 = vld [vmem:[#allocation6 + $0x60] ss:$8 sps:$4 sm:$0xff]   ;;  %v1674_v25 = vld [vmem:[#allocation6 + $0x70] ss:$8 sps:$4 sm:$0xff]  }
  0x64   :  { %v1672_v22 = vld [vmem:[#allocation6 + $0x74] ss:$8 sps:$4 sm:$0xff]   ;;  %v1698_v23 = vld [vmem:[#allocation8 + $0x60] ss:$16 sps:$4 sm:$0xff]   ;;  %v1683_v38 = vld [vmem:[#allocation8 + $0x28] ss:$16 sps:$4 sm:$0xff]  }
  0x65   :  { %241 = vmatpush1.bf16.msra.mxu0 %v1659_v6  ;;  %704 = vmatpush1.bf16.msra.mxu1 %v1686_v15  ;;  %v1699_v24 = vld [vmem:[#allocation8 + $0x84] ss:$16 sps:$4 sm:$0xff]   ;;  %v1704_v29 = vld [vmem:[#allocation8 + $0x80] ss:$16 sps:$4 sm:$0xff]   ;;  %v1685_v33 = vld [vmem:[#allocation8 + $0x2c] ss:$16 sps:$4 sm:$0xff]  }
  0x66   :  { %242 = vmatprep.subr.bf16.mxu0 %v1660_v7  ;;  %705 = vmatprep.subr.bf16.mxu1 %v1687_v16  ;;  %v122_v26 = vld [vmem:[#allocation3] sm:$0xff]  ;;  %v125_v37 = vld [vmem:[#allocation3 + $0x18] sm:$0xff]  ;;  %s1416_s18 = sshll.u32 %s1963_s16, 4  ;;  %s1417_s18 = int_to_ptr.vmem [resolvable:$true] %s1416_s18 }
  0x67   :  { %v1705_v30 = vld [vmem:[#allocation8 + $0xa4] ss:$16 sps:$4 sm:$0xff]   ;;  %v126_v31 = vpack.c.bf16 %v123_v27, %v122_v26  ;;  %v1710_v34 = vld [vmem:[#allocation8 + $0xa0] ss:$16 sps:$4 sm:$0xff]   ;;  %v1691_v39 = vld [vmem:[#allocation8 + $0x4c] ss:$16 sps:$4 sm:$0xff]   ;;  %v127_v42 = vpack.c.bf16 %v125_v37, %v124_v36  ;;  %p1926_p13 = scmp.lt.s32.totalorder %s1417_s18, %s1417_s18 }
  0x68   :  { %v1711_v35 = vld [vmem:[#allocation8 + $0xc4] ss:$16 sps:$4 sm:$0xff]   ;;  %v1716_v40 = vld [vmem:[#allocation8 + $0xc0] ss:$16 sps:$4 sm:$0xff]   ;;  %v1689_v43 = vld [vmem:[#allocation8 + $0x48] ss:$16 sps:$4 sm:$0xff]  }
  0x69   :  { %243 = vmatpush1.bf16.msra.mxu0 %v1662_v8  ;;  %706 = vmatpush1.bf16.msra.mxu1 %v1692_v19  ;;  %v1717_v41 = vld [vmem:[#allocation8 + $0xe4] ss:$16 sps:$4 sm:$0xff]   ;;  %v1697_v44 = vld [vmem:[#allocation8 + $0x6c] ss:$16 sps:$4 sm:$0xff]   ;;  %v1722_v45 = vld [vmem:[#allocation8 + $0xe0] ss:$16 sps:$4 sm:$0xff]  }
  0x6a   :  { %244 = vmatprep.subr.bf16.mxu0 %v1663_v9  ;;  %707 = vmatprep.subr.bf16.mxu1 %v1693_v20  ;;  %v1723_v46 = vld [vmem:[#allocation8 + $0x104] ss:$16 sps:$4 sm:$0xff]   ;;  %v1695_v47 = vld [vmem:[#allocation8 + $0x68] ss:$16 sps:$4 sm:$0xff]   ;;  %v1703_v48 = vld [vmem:[#allocation8 + $0x8c] ss:$16 sps:$4 sm:$0xff]  }
  0x6b   :  { %v1728_v49 = vld [vmem:[#allocation8 + $0x100] ss:$16 sps:$4 sm:$0xff]   ;;  %v1729_v50 = vld [vmem:[#allocation8 + $0x124] ss:$16 sps:$4 sm:$0xff]   ;;  %v1701_v51 = vld [vmem:[#allocation8 + $0x88] ss:$16 sps:$4 sm:$0xff]  }
  0x6c   :  { %v1709_v52 = vld [vmem:[#allocation8 + $0xac] ss:$16 sps:$4 sm:$0xff]   ;;  %v1734_v53 = vld [vmem:[#allocation8 + $0x120] ss:$16 sps:$4 sm:$0xff]   ;;  %v1707_v54 = vld [vmem:[#allocation8 + $0xa8] ss:$16 sps:$4 sm:$0xff]  }
  0x6d   :  { %245 = vmatpush1.bf16.msra.mxu0 %v1665_v11  ;;  %708 = vmatpush1.bf16.msra.mxu1 %v1698_v23  ;;  %v1735_v55 = vld [vmem:[#allocation8 + $0x144] ss:$16 sps:$4 sm:$0xff]   ;;  %v1715_v56 = vld [vmem:[#allocation8 + $0xcc] ss:$16 sps:$4 sm:$0xff]   ;;  %v1740_v57 = vld [vmem:[#allocation8 + $0x140] ss:$16 sps:$4 sm:$0xff]  }
  0x6e   :  { %246 = vmatprep.subr.bf16.mxu0 %v1666_v14  ;;  %709 = vmatprep.subr.bf16.mxu1 %v1699_v24  ;;  %v1741_v58 = vld [vmem:[#allocation8 + $0x164] ss:$16 sps:$4 sm:$0xff]   ;;  %v1713_v59 = vld [vmem:[#allocation8 + $0xc8] ss:$16 sps:$4 sm:$0xff]   ;;  %v1721_v60 = vld [vmem:[#allocation8 + $0xec] ss:$16 sps:$4 sm:$0xff]  }
  0x6f   :  { %v1746_v61 = vld [vmem:[#allocation8 + $0x160] ss:$16 sps:$4 sm:$0xff]   ;;  %v1747_v62 = vld [vmem:[#allocation8 + $0x184] ss:$16 sps:$4 sm:$0xff]   ;;  %v1719_v63 = vld [vmem:[#allocation8 + $0xe8] ss:$16 sps:$4 sm:$0xff]  }
  0x70   :  { %v1752_v1 = vld [vmem:[#allocation8 + $0x180] ss:$16 sps:$4 sm:$0xff]   ;;  %v1753_v2 = vld [vmem:[#allocation8 + $0x1a4] ss:$16 sps:$4 sm:$0xff]   ;;  %v1725_v3 = vld [vmem:[#allocation8 + $0x108] ss:$16 sps:$4 sm:$0xff]  }
  0x71   :  { %247 = vmatpush1.bf16.msra.mxu0 %v1668_v17  ;;  %710 = vmatpush1.bf16.msra.mxu1 %v1704_v29  ;;  %v1733_v4 = vld [vmem:[#allocation8 + $0x12c] ss:$16 sps:$4 sm:$0xff]   ;;  %v1731_v5 = vld [vmem:[#allocation8 + $0x128] ss:$16 sps:$4 sm:$0xff]   ;;  %v1758_v14 = vld [vmem:[#allocation8 + $0x1a0] ss:$16 sps:$4 sm:$0xff]  }
  0x72   :  { %248 = vmatprep.subr.bf16.mxu0 %v1669_v18  ;;  %711 = vmatprep.subr.bf16.mxu1 %v1705_v30  ;;  %v1739_v6 = vld [vmem:[#allocation8 + $0x14c] ss:$16 sps:$4 sm:$0xff]   ;;  %v1737_v7 = vld [vmem:[#allocation8 + $0x148] ss:$16 sps:$4 sm:$0xff]   ;;  %v1759_v15 = vld [vmem:[#allocation8 + $0x1c4] ss:$16 sps:$4 sm:$0xff]  }
  0x73   :  { %v1745_v8 = vld [vmem:[#allocation8 + $0x16c] ss:$16 sps:$4 sm:$0xff]   ;;  %v1743_v9 = vld [vmem:[#allocation8 + $0x168] ss:$16 sps:$4 sm:$0xff]   ;;  %v1764_v18 = vld [vmem:[#allocation8 + $0x1c0] ss:$16 sps:$4 sm:$0xff]  }
  0x74   :  { %v1751_v10 = vld [vmem:[#allocation8 + $0x18c] ss:$16 sps:$4 sm:$0xff]   ;;  %v1749_v11 = vld [vmem:[#allocation8 + $0x188] ss:$16 sps:$4 sm:$0xff]   ;;  %v1765_v19 = vld [vmem:[#allocation8 + $0x1e4] ss:$16 sps:$4 sm:$0xff]  }
  0x75   :  { %249 = vmatpush1.bf16.msra.mxu0 %v1671_v21  ;;  %712 = vmatpush1.bf16.msra.mxu1 %v1710_v34  ;;  %v1757_v12 = vld [vmem:[#allocation8 + $0x1ac] ss:$16 sps:$4 sm:$0xff]   ;;  %v1755_v13 = vld [vmem:[#allocation8 + $0x1a8] ss:$16 sps:$4 sm:$0xff]   ;;  %v1771_v23 = vld [vmem:[#allocation9 + $0x40] sm:$0xff]   ;;  %s1921_s20 = scalar_lea.vmem %s1417_s18, 512 }
  0x76   :  { %250 = vmatprep.subr.bf16.mxu0 %v1672_v22  ;;  %713 = vmatprep.subr.bf16.mxu1 %v1711_v35  ;;  %v1763_v16 = vld [vmem:[#allocation8 + $0x1cc] ss:$16 sps:$4 sm:$0xff]   ;;  %v1761_v17 = vld [vmem:[#allocation8 + $0x1c8] ss:$16 sps:$4 sm:$0xff]   ;;  %v1770_v22 = vld [vmem:[#allocation8 + $0x1e0] ss:$16 sps:$4 sm:$0xff]   ;;  %p1922_p12 = scmp.ne.s32.totalorder %s1417_s18, %s1921_s20  ;;  %p1927_p0 = scmp.lt.s32.totalorder %s1921_s20, %s1921_s20 }
  0x77   :  { %v1769_v20 = vld [vmem:[#allocation8 + $0x1ec] ss:$16 sps:$4 sm:$0xff]   ;;  %v1767_v21 = vld [vmem:[#allocation8 + $0x1e8] ss:$16 sps:$4 sm:$0xff]   ;;  %v1772_v24 = vld [vmem:[#allocation9 + $0xc0] sm:$0xff]  }
  0x78   :  { %p1928_p1 = por %p1927_p0, %p1926_p13 }
  0x79   :  { %251 = vmatpush1.bf16.msra.mxu0 %v1674_v25  ;;  %714 = vmatpush1.bf16.msra.mxu1 %v1716_v40  ;;  %v146_v25 = vlaneseq }
  0x7a   :  { %754 = vmatprep.subr.bf16.mxu0 %v1679_v28  ;;  %715 = vmatprep.subr.bf16.mxu1 %v1717_v41  ;;  %v144_v28 = vld [vmem:[%s2145_s2] sm:$0x3]  ;;  %p1929_p2 = pnand %p1928_p1, %p1922_p12 }
  0x7b   :  { %v2102_v26 = vshrl.u32 %v146_v25, 7  ;;  %v1802_v25 = vld [vmem:[#allocation9 + $0xb8] sm:$0xff]  }
  0x7c   :  { %269 = vmatmul.mubr.bf16.vlgmr.msra.gmra.mrb[0].mxu0 %v126_v31 }
  0x7d   :  { %278 = vmatprep.mubr.bf16.mxu0 %v1962_v0  ;;  %755 = vmatpush1.bf16.msra.mxu0 %v1677_v32  ;;  %v1727_v0 = vld [vmem:[#allocation8 + $0x10c] ss:$16 sps:$4 sm:$0xff]   ;;  %v148_v27 = vsub.s32 0, %v2102_v26  ;;  %v152_v29 = vsub.s32 1, %v2102_v26 }
  0x7e   :  { %756 = vmatprep.subr.bf16.mxu0 %v1685_v33  ;;  %716 = vmatpush1.bf16.msra.mxu1 %v1722_v45 }
  0x7f   :  { %717 = vmatprep.subr.bf16.mxu1 %v1723_v46  ;;  %v149_v30 = vrot.slane %v144_v28, %v148_v27  ;;  %v153_v31 = vrot.slane %v144_v28, %v152_v29  ;;  %v1803_v28 = vld [vmem:[#allocation11] sm:$0xff]  }
  0x81   :  { %757 = vmatpush1.bf16.msra.mxu0 %v1683_v38 }
  0x82   :  { %758 = vmatprep.subr.bf16.mxu0 %v1691_v39  ;;  %718 = vmatpush1.bf16.msra.mxu1 %v1728_v49 }
  0x83   :  { %719 = vmatprep.subr.bf16.mxu1 %v1729_v50 }
  0x84   :  { %279 = vmatmul.mubr.bf16.gmra.mrb[4].mxu0 %v127_v42 }
  0x85   :  { %759 = vmatpush1.bf16.msra.mxu0 %v1689_v43 }
  0x86   :  { %760 = vmatprep.subr.bf16.mxu0 %v1697_v44  ;;  %720 = vmatpush1.bf16.msra.mxu1 %v1734_v53 }
  0x87   :  { %721 = vmatprep.subr.bf16.mxu1 %v1735_v55 }
  0x89   :  { %761 = vmatpush1.bf16.msra.mxu0 %v1695_v47  ;;  %v1773_v47 = vld [vmem:[#allocation9] sm:$0xff]  }
  0x8a   :  { %762 = vmatprep.subr.bf16.mxu0 %v1703_v48  ;;  %722 = vmatpush1.bf16.msra.mxu1 %v1740_v57  ;;  %v1774_v48 = vld [vmem:[#allocation9 + $0x80] sm:$0xff]  }
  0x8b   :  { %723 = vmatprep.subr.bf16.mxu1 %v1741_v58  ;;  %v1777_v58 = vld [vmem:[#allocation9 + $0x8] sm:$0xff]  }
  0x8d   :  { %763 = vmatpush1.bf16.msra.mxu0 %v1701_v51  ;;  %v1775_v51 = vld [vmem:[#allocation9 + $0x48] sm:$0xff]  }
  0x8e   :  { %764 = vmatprep.subr.bf16.mxu0 %v1709_v52  ;;  %724 = vmatpush1.bf16.msra.mxu1 %v1746_v61  ;;  %v1776_v52 = vld [vmem:[#allocation9 + $0xc8] sm:$0xff]  }
  0x8f   :  { %725 = vmatprep.subr.bf16.mxu1 %v1747_v62  ;;  %v1779_v62 = vld [vmem:[#allocation9 + $0x50] sm:$0xff]  }
  0x91   :  { %765 = vmatpush1.bf16.msra.mxu0 %v1707_v54 }
  0x92   :  { %766 = vmatprep.subr.bf16.mxu0 %v1715_v56  ;;  %726 = vmatpush1.bf16.msra.mxu1 %v1752_v1 }
  0x93   :  { %727 = vmatprep.subr.bf16.mxu1 %v1753_v2 }
  0x95   :  { %767 = vmatpush1.bf16.msra.mxu0 %v1713_v59  ;;  %v1778_v59 = vld [vmem:[#allocation9 + $0x88] sm:$0xff]  }
  0x96   :  { %768 = vmatprep.subr.bf16.mxu0 %v1721_v60  ;;  %728 = vmatpush1.bf16.msra.mxu1 %v1758_v14  ;;  %v1791_v14 = vld [vmem:[#allocation9 + $0x68] sm:$0xff]  }
  0x97   :  { %729 = vmatprep.subr.bf16.mxu1 %v1759_v15  ;;  %v1792_v15 = vld [vmem:[#allocation9 + $0xe8] sm:$0xff]  }
  0x99   :  { %769 = vmatpush1.bf16.msra.mxu0 %v1719_v63  ;;  %v1780_v63 = vld [vmem:[#allocation9 + $0xd0] sm:$0xff]  }
  0x9a   :  { %770 = vmatprep.subr.bf16.mxu0 %v1727_v0  ;;  %730 = vmatpush1.bf16.msra.mxu1 %v1764_v18  ;;  %v1795_v18 = vld [vmem:[#allocation9 + $0x70] sm:$0xff]  }
  0x9b   :  { %731 = vmatprep.subr.bf16.mxu1 %v1765_v19  ;;  %v1796_v19 = vld [vmem:[#allocation9 + $0xf0] sm:$0xff]  }
  0x9d   :  { %771 = vmatpush1.bf16.msra.mxu0 %v1725_v3 }
  0x9e   :  { %772 = vmatprep.subr.bf16.mxu0 %v1733_v4  ;;  %732 = vmatpush1.bf16.msra.mxu1 %v1770_v22  ;;  %v1781_v4 = vld [vmem:[#allocation9 + $0x10] sm:$0xff]   ;;  %v1799_v22 = vld [vmem:[#allocation9 + $0x78] sm:$0xff]  }
  0x9f   :  { %1552 = vmatprep.subr.bf16.mxu1 %v1771_v23  ;;  %v1800_v23 = vld [vmem:[#allocation9 + $0xf8] sm:$0xff]  }
  0xa1   :  { %773 = vmatpush1.bf16.msra.mxu0 %v1731_v5  ;;  %v1782_v5 = vld [vmem:[#allocation9 + $0x90] sm:$0xff]  }
  0xa2   :  { %774 = vmatprep.subr.bf16.mxu0 %v1739_v6  ;;  %v1783_v6 = vld [vmem:[#allocation9 + $0x58] sm:$0xff]  }
  0xa5   :  { %775 = vmatpush1.bf16.msra.mxu0 %v1737_v7  ;;  %v1784_v7 = vld [vmem:[#allocation9 + $0xd8] sm:$0xff]  }
  0xa6   :  { %776 = vmatprep.subr.bf16.mxu0 %v1745_v8  ;;  %v1785_v8 = vld [vmem:[#allocation9 + $0x18] sm:$0xff]  }
  0xa9   :  { %777 = vmatpush1.bf16.msra.mxu0 %v1743_v9  ;;  %v1786_v9 = vld [vmem:[#allocation9 + $0x98] sm:$0xff]  }
  0xaa   :  { %778 = vmatprep.subr.bf16.mxu0 %v1751_v10  ;;  %v1787_v10 = vld [vmem:[#allocation9 + $0x60] sm:$0xff]  }
  0xad   :  { %779 = vmatpush1.bf16.msra.mxu0 %v1749_v11  ;;  %v1788_v11 = vld [vmem:[#allocation9 + $0xe0] sm:$0xff]  }
  0xae   :  { %780 = vmatprep.subr.bf16.mxu0 %v1757_v12  ;;  %v1789_v12 = vld [vmem:[#allocation9 + $0x20] sm:$0xff]  }
  0xb1   :  { %781 = vmatpush1.bf16.msra.mxu0 %v1755_v13  ;;  %v1790_v13 = vld [vmem:[#allocation9 + $0xa0] sm:$0xff]  }
  0xb2   :  { %782 = vmatprep.subr.bf16.mxu0 %v1763_v16  ;;  %v1793_v16 = vld [vmem:[#allocation9 + $0x28] sm:$0xff]  }
  0xb5   :  { %783 = vmatpush1.bf16.msra.mxu0 %v1761_v17  ;;  %v1794_v17 = vld [vmem:[#allocation9 + $0xa8] sm:$0xff]  }
  0xb6   :  { %784 = vmatprep.subr.bf16.mxu0 %v1769_v20  ;;  %v1797_v20 = vld [vmem:[#allocation9 + $0x30] sm:$0xff]  }
  0xb9   :  { %785 = vmatpush1.bf16.msra.mxu0 %v1767_v21  ;;  %v1798_v21 = vld [vmem:[#allocation9 + $0xb0] sm:$0xff]  }
  0xba   :  { %1580 = vmatprep.subr.bf16.mxu0 %v1772_v24  ;;  %v1801_v24 = vld [vmem:[#allocation9 + $0x38] sm:$0xff]  }
 0x14f   :  { %v270_v32 = vpop.f32.mrb[0].mxu0 }
 0x150   :  { %v271_v33 = vadd.f32 %v270_v32, %v149_v30  ;;  %v272_v34 = vpop.f32.mrb[1].mxu0  ;;  %v874_v32 = vsub.s32 3, %v2102_v26 }
 0x151   :  { %v273_v35 = vadd.f32 %v272_v34, %v153_v31  ;;  %v274_v36 = vpop.f32.mrb[2].mxu0 }
 0x152   :  { %v275_v37 = vadd.f32 %v274_v36, %v149_v30  ;;  %v276_v38 = vpop.f32.mrb[3].mxu0  ;;  %v289_v40 = vmax.f32 %v271_v33, 0.0 }
 0x153   :  { %v277_v39 = vadd.f32 %v276_v38, %v153_v31  ;;  %v290_v42 = vmax.f32 %v273_v35, 0.0 }
 0x154   :  { %v291_v41 = vmax.f32 %v275_v37, 0.0 }
 0x155   :  { %v292_v43 = vmax.f32 %v277_v39, 0.0 }
 0x156   :  { %v297_v44 = vpack.c.bf16 %v291_v41, %v289_v40 }
 0x157   :  { %v280_v45 = vpop.f32.mrb[4].mxu0  ;;  %v298_v46 = vpack.c.bf16 %v292_v43, %v290_v42 }
 0x158   :  { %v281_v49 = vadd.f32 %v280_v45, %v149_v30  ;;  %v282_v50 = vpop.f32.mrb[5].mxu0 }
 0x159   :  { %v283_v53 = vadd.f32 %v282_v50, %v153_v31  ;;  %v284_v54 = vpop.f32.mrb[6].mxu0  ;;  %733 = vmatprep.mubr.bf16.mxu1 %v298_v46  ;;  %786 = vmatprep.mubr.bf16.mxu0 %v298_v46 }
 0x15a   :  { %v285_v55 = vadd.f32 %v284_v54, %v149_v30  ;;  %v286_v56 = vpop.f32.mrb[7].mxu0  ;;  %734 = vmatmul.mubr.bf16.vlgmr.msra.gmra.mrb[0].mxu1 %v297_v44  ;;  %787 = vmatmul.mubr.bf16.vlgmr.msra.gmra.mrb[8].mxu0 %v297_v44  ;;  %v293_v60 = vmax.f32 %v281_v49, 0.0  ;;  %v870_v30 = vsub.s32 2, %v2102_v26 }
 0x15b   :  { %v287_v57 = vadd.f32 %v286_v56, %v153_v31  ;;  %1553 = vmatpush3.bf16.msra.mxu1 %v1773_v47  ;;  %1581 = vmatpush3.bf16.msra.mxu0 %v1774_v48  ;;  %v294_v0 = vmax.f32 %v283_v53, 0.0  ;;  %v858_v31 = vld [vmem:[%s2147_s4] sm:$0xf] }
 0x15c   :  { %v295_v61 = vmax.f32 %v285_v55, 0.0  ;;  %1554 = vmatprep.subr.bf16.mxu1 %v1775_v51  ;;  %1582 = vmatprep.subr.bf16.mxu0 %v1776_v52  ;;  %v863_v33 = vrot.slane %v858_v31, %v148_v27  ;;  %v871_v34 = vrot.slane %v858_v31, %v870_v30  ;;  %v867_v35 = vrot.slane %v858_v31, %v152_v29 }
 0x15d   :  { %v296_v1 = vmax.f32 %v287_v57, 0.0  ;;  %v875_v36 = vrot.slane %v858_v31, %v874_v32  ;;  %v1807_v32 = vld [vmem:[#allocation11 + $0x20] sm:$0xff]  }
 0x15e   :  { %v299_v2 = vpack.c.bf16 %v295_v61, %v293_v60 }
 0x15f   :  { %v300_v3 = vpack.c.bf16 %v296_v1, %v294_v0  ;;  %1555 = vmatpush3.bf16.msra.mxu1 %v1777_v58  ;;  %1583 = vmatpush3.bf16.msra.mxu0 %v1778_v59 }
 0x160   :  { %1556 = vmatprep.subr.bf16.mxu1 %v1779_v62  ;;  %1584 = vmatprep.subr.bf16.mxu0 %v1780_v63 }
 0x161   :  { %743 = vmatprep.mubr.bf16.mxu1 %v300_v3  ;;  %796 = vmatprep.mubr.bf16.mxu0 %v300_v3 }
 0x162   :  { %744 = vmatmul.mubr.bf16.gmra.mrb[4].mxu1 %v299_v2  ;;  %797 = vmatmul.mubr.bf16.gmra.mrb[12].mxu0 %v299_v2 }
 0x163   :  { %1557 = vmatpush3.bf16.msra.mxu1 %v1781_v4  ;;  %1585 = vmatpush3.bf16.msra.mxu0 %v1782_v5  ;;  %v1804_v4 = vld [vmem:[#allocation11 + $0x8] sm:$0xff]  }
 0x164   :  { %1558 = vmatprep.subr.bf16.mxu1 %v1783_v6  ;;  %1586 = vmatprep.subr.bf16.mxu0 %v1784_v7 }
 0x167   :  { %1559 = vmatpush3.bf16.msra.mxu1 %v1785_v8  ;;  %1587 = vmatpush3.bf16.msra.mxu0 %v1786_v9 }
 0x168   :  { %1560 = vmatprep.subr.bf16.mxu1 %v1787_v10  ;;  %1588 = vmatprep.subr.bf16.mxu0 %v1788_v11 }
 0x16b   :  { %1561 = vmatpush3.bf16.msra.mxu1 %v1789_v12  ;;  %1589 = vmatpush3.bf16.msra.mxu0 %v1790_v13 }
 0x16c   :  { %1562 = vmatprep.subr.bf16.mxu1 %v1791_v14  ;;  %1590 = vmatprep.subr.bf16.mxu0 %v1792_v15 }
 0x16f   :  { %1563 = vmatpush3.bf16.msra.mxu1 %v1793_v16  ;;  %1591 = vmatpush3.bf16.msra.mxu0 %v1794_v17 }
 0x170   :  { %1564 = vmatprep.subr.bf16.mxu1 %v1795_v18  ;;  %1592 = vmatprep.subr.bf16.mxu0 %v1796_v19  ;;  %v1805_v19 = vld [vmem:[#allocation11 + $0x10] sm:$0xff]  }
 0x173   :  { %1565 = vmatpush3.bf16.msra.mxu1 %v1797_v20  ;;  %1593 = vmatpush3.bf16.msra.mxu0 %v1798_v21 }
 0x174   :  { %1566 = vmatprep.subr.bf16.mxu1 %v1799_v22  ;;  %1594 = vmatprep.subr.bf16.mxu0 %v1800_v23 }
 0x177   :  { %1567 = vmatpush3.bf16.msra.mxu1 %v1801_v24  ;;  %1595 = vmatpush3.bf16.msra.mxu0 %v1802_v25 }
 0x178   :  { %1618 = vmatprep.subr.bf16.mxu1 %v1803_v28 }
 0x22d   :  { %v735_v37 = vpop.f32.mrb[0].mxu1  ;;  %v788_v38 = vpop.f32.mrb[8].mxu0 }
 0x22e   :  { %v880_v39 = vadd.f32 %v863_v33, %v735_v37  ;;  %v882_v40 = vadd.f32 %v871_v34, %v788_v38  ;;  %v737_v41 = vpop.f32.mrb[1].mxu1  ;;  %v790_v42 = vpop.f32.mrb[9].mxu0  ;;  %v1510_v38 = vld [vmem:[%s2149_s6] ss:$0 sm:$0xff] }
 0x22f   :  { %v881_v43 = vadd.f32 %v867_v35, %v737_v41  ;;  %v883_v44 = vadd.f32 %v875_v36, %v790_v42  ;;  %v739_v45 = vpop.f32.mrb[2].mxu1  ;;  %v792_v46 = vpop.f32.mrb[10].mxu0 }
 0x230   :  { %v884_v47 = vadd.f32 %v863_v33, %v739_v45  ;;  %v886_v48 = vadd.f32 %v871_v34, %v792_v46  ;;  %v741_v49 = vpop.f32.mrb[3].mxu1  ;;  %v794_v50 = vpop.f32.mrb[11].mxu0  ;;  %v896_v52 = vmax.f32 %v880_v39, 0.0  ;;  %v898_v26 = vmax.f32 %v882_v40, 0.0 }
 0x231   :  { %v885_v27 = vadd.f32 %v867_v35, %v741_v49  ;;  %v887_v51 = vadd.f32 %v875_v36, %v794_v50  ;;  %v897_v54 = vmax.f32 %v881_v43, 0.0  ;;  %v899_v55 = vmax.f32 %v883_v44, 0.0 }
 0x232   :  { %v900_v29 = vmax.f32 %v884_v47, 0.0  ;;  %v902_v53 = vmax.f32 %v886_v48, 0.0 }
 0x233   :  { %v901_v56 = vmax.f32 %v885_v27, 0.0  ;;  %v903_v57 = vmax.f32 %v887_v51, 0.0 }
 0x234   :  { %v912_v58 = vpack.c.bf16 %v900_v29, %v896_v52  ;;  %v914_v59 = vpack.c.bf16 %v902_v53, %v898_v26 }
 0x235   :  { %v913_v60 = vpack.c.bf16 %v901_v56, %v897_v54  ;;  %v915_v61 = vpack.c.bf16 %v903_v57, %v899_v55  ;;  %v745_v62 = vpop.f32.mrb[4].mxu1  ;;  %v798_v63 = vpop.f32.mrb[12].mxu0 }
 0x236   :  { %v888_v0 = vadd.f32 %v863_v33, %v745_v62  ;;  %v890_v1 = vadd.f32 %v871_v34, %v798_v63  ;;  %v747_v2 = vpop.f32.mrb[5].mxu1  ;;  %v800_v3 = vpop.f32.mrb[13].mxu0 }
 0x237   :  { %v889_v5 = vadd.f32 %v867_v35, %v747_v2  ;;  %v891_v6 = vadd.f32 %v875_v36, %v800_v3  ;;  %v749_v7 = vpop.f32.mrb[6].mxu1  ;;  %v802_v8 = vpop.f32.mrb[14].mxu0  ;;  %1215 = vmatprep.mubr.bf16.mxu1 %v913_v60  ;;  %1264 = vmatprep.mubr.bf16.mxu0 %v915_v61 }
 0x238   :  { %v892_v9 = vadd.f32 %v863_v33, %v749_v7  ;;  %v894_v10 = vadd.f32 %v871_v34, %v802_v8  ;;  %v751_v11 = vpop.f32.mrb[7].mxu1  ;;  %v804_v12 = vpop.f32.mrb[15].mxu0  ;;  %1216 = vmatmul.mubr.bf16.vlgmr.msra.gmra.mrb[8].mxu1 %v912_v58  ;;  %1265 = vmatmul.mubr.bf16.vlgmr.msra.gmra.mrb[16].mxu0 %v914_v59  ;;  %v904_v15 = vmax.f32 %v888_v0, 0.0  ;;  %v906_v16 = vmax.f32 %v890_v1, 0.0  ;;  %v1808_v33 = vld [vmem:[#allocation11 + $0x28] sm:$0xff]   ;;  %v1809_v34 = vld [vmem:[#allocation11 + $0x30] sm:$0xff]  }
 0x239   :  { %v893_v13 = vadd.f32 %v867_v35, %v751_v11  ;;  %v895_v14 = vadd.f32 %v875_v36, %v804_v12  ;;  %1619 = vmatpush3.bf16.msra.mxu1 %v1803_v28  ;;  %v905_v20 = vmax.f32 %v889_v5, 0.0  ;;  %v907_v21 = vmax.f32 %v891_v6, 0.0  ;;  %v1806_v28 = vld [vmem:[#allocation11 + $0x18] sm:$0xff]   ;;  %v1543_v8 = vld [vmem:[%s2151_s8] ss:$0 sm:$0xff] }
 0x23a   :  { %v908_v17 = vmax.f32 %v892_v9, 0.0  ;;  %v910_v18 = vmax.f32 %v894_v10, 0.0  ;;  %1620 = vmatprep.subr.bf16.mxu1 %v1804_v4  ;;  %v1810_v35 = vld [vmem:[#allocation11 + $0x38] sm:$0xff]  }
 0x23b   :  { %v909_v22 = vmax.f32 %v893_v13, 0.0  ;;  %v911_v23 = vmax.f32 %v895_v14, 0.0 }
 0x23c   :  { %v916_v24 = vpack.c.bf16 %v908_v17, %v904_v15  ;;  %v918_v25 = vpack.c.bf16 %v910_v18, %v906_v16 }
 0x23d   :  { %v917_v30 = vpack.c.bf16 %v909_v22, %v905_v20  ;;  %v919_v31 = vpack.c.bf16 %v911_v23, %v907_v21  ;;  %1621 = vmatpush3.bf16.msra.mxu1 %v1804_v4 }
 0x23e   :  { %1622 = vmatprep.subr.bf16.mxu1 %v1805_v19 }
 0x23f   :  { %1223 = vmatprep.mubr.bf16.mxu1 %v917_v30  ;;  %1272 = vmatprep.mubr.bf16.mxu0 %v919_v31 }
 0x240   :  { %1224 = vmatmul.mubr.bf16.gmra.mrb[12].mxu1 %v916_v24  ;;  %1273 = vmatmul.mubr.bf16.gmra.mrb[20].mxu0 %v918_v25 }
 0x241   :  { %1623 = vmatpush3.bf16.msra.mxu1 %v1805_v19 }
 0x242   :  { %1624 = vmatprep.subr.bf16.mxu1 %v1806_v28 }
 0x245   :  { %1625 = vmatpush3.bf16.msra.mxu1 %v1806_v28 }
 0x246   :  { %1626 = vmatprep.subr.bf16.mxu1 %v1807_v32 }
 0x249   :  { %1627 = vmatpush3.bf16.msra.mxu1 %v1807_v32 }
 0x24a   :  { %1628 = vmatprep.subr.bf16.mxu1 %v1808_v33 }
 0x24d   :  { %1629 = vmatpush3.bf16.msra.mxu1 %v1808_v33 }
 0x24e   :  { %1630 = vmatprep.subr.bf16.mxu1 %v1809_v34 }
 0x251   :  { %1631 = vmatpush3.bf16.msra.mxu1 %v1809_v34 }
 0x252   :  { %1632 = vmatprep.subr.bf16.mxu1 %v1810_v35 }
 0x255   :  { %1633 = vmatpush3.bf16.msra.mxu1 %v1810_v35 }
 0x30b   :  { %v1568_v36 = vpop.f32.mrb[8].mxu1  ;;  %v1596_v37 = vpop.f32.mrb[16].mxu0 }
 0x30c   :  { %v1569_v39 = vpop.f32.mrb[9].mxu1  ;;  %v1597_v40 = vpop.f32.mrb[17].mxu0 }
 0x30d   :  { %v1570_v41 = vadd.f32 %v1569_v39, %v1568_v36  ;;  %v1598_v42 = vadd.f32 %v1597_v40, %v1596_v37  ;;  %v1571_v43 = vpop.f32.mrb[10].mxu1  ;;  %v1599_v44 = vpop.f32.mrb[18].mxu0 }
 0x30e   :  { %v1572_v45 = vpop.f32.mrb[11].mxu1  ;;  %v1600_v46 = vpop.f32.mrb[19].mxu0 }
 0x30f   :  { %v1218_v47 = vadd.f32 %v1570_v41, %v1510_v38  ;;  %v1573_v48 = vadd.f32 %v1572_v45, %v1571_v43  ;;  %v1601_v49 = vadd.f32 %v1600_v46, %v1599_v44 }
 0x311   :  { %v1267_v50 = vadd.f32 %v1598_v42, %v1218_v47  ;;  %v1221_v27 = vadd.f32 %v1573_v48, %v1510_v38 }
 0x313   :  { %v1270_v51 = vadd.f32 %v1601_v49, %v1221_v27  ;;  %v1574_v52 = vpop.f32.mrb[12].mxu1  ;;  %v1602_v26 = vpop.f32.mrb[20].mxu0  ;;  %v1281_v54 = vmax.f32 %v1267_v50, 0.0 }
 0x314   :  { %v1575_v29 = vpop.f32.mrb[13].mxu1  ;;  %v1603_v53 = vpop.f32.mrb[21].mxu0 }
 0x315   :  { %v1282_v55 = vmax.f32 %v1270_v51, 0.0  ;;  %v1576_v56 = vadd.f32 %v1575_v29, %v1574_v52  ;;  %v1604_v57 = vadd.f32 %v1603_v53, %v1602_v26  ;;  %v1577_v58 = vpop.f32.mrb[14].mxu1  ;;  %v1605_v59 = vpop.f32.mrb[22].mxu0 }
 0x316   :  { %v1578_v60 = vpop.f32.mrb[15].mxu1  ;;  %v1606_v61 = vpop.f32.mrb[23].mxu0 }
 0x317   :  { %v1226_v62 = vadd.f32 %v1576_v56, %v1510_v38  ;;  %v1579_v63 = vadd.f32 %v1578_v60, %v1577_v58  ;;  %v1607_v0 = vadd.f32 %v1606_v61, %v1605_v59  ;;  %v1285_v1 = vpack.c.bf16 %v1282_v55, %v1281_v54 }
 0x319   :  { %v1275_v2 = vadd.f32 %v1604_v57, %v1226_v62  ;;  %v1229_v3 = vadd.f32 %v1579_v63, %v1510_v38  ;;  %1634 = vmatprep.mubr.bf16.mxu1 %v1285_v1 }
 0x31b   :  { %v1278_v4 = vadd.f32 %v1607_v0, %v1229_v3  ;;  %v1283_v5 = vmax.f32 %v1275_v2, 0.0 }
 0x31d   :  { %v1284_v6 = vmax.f32 %v1278_v4, 0.0 }
 0x31f   :  { %v1286_v7 = vpack.c.bf16 %v1284_v6, %v1283_v5 }
 0x321   :  { %1635 = vmatmul.mubr.bf16.vlgmr.msra.gmra.mrb[16].mxu1 %v1286_v7 }
 0x3f4   :  { %v1636_v9 = vpop.f32.mrb[16].mxu1 }
 0x3f5   :  { %v1401_v10 = vadd.f32 %v1636_v9, %v1543_v8  ;;  %v1392_v11 = vpop.f32.mrb[17].mxu1 }
 0x3f6   :  { %v1393_v12 = vadd.f32 %v1543_v8, %v1392_v11  ;;  %v1637_v13 = vpop.f32.mrb[18].mxu1 }
 0x3f7   :  { %1409 = vst [vmem:[#allocation12 + $0x10] sm:$0xff] %v1401_v10  ;;  %v1404_v14 = vadd.f32 %v1637_v13, %v1543_v8  ;;  %v1395_v15 = vpop.f32.mrb[19].mxu1 }
 0x3f8   :  { %1407 = vst [vmem:[#allocation12] sm:$0xff] %v1393_v12  ;;  %v1396_v16 = vadd.f32 %v1543_v8, %v1395_v15 }
 0x3f9   :  { %1410 = vst [vmem:[#allocation12 + $0x18] sm:$0xff] %v1404_v14 }
 0x3fa   :  { %1408 = vst [vmem:[#allocation12 + $0x8] sm:$0xff] %v1396_v16 }
 0x3fb   :  { %1932 = shalt.err (!%p1929_p2)
}
 0x3fc   :  { %s1933_s17 = scalar_lea.hbm %s2152_s9, 512 }
 0x3fd   :  { %p1934_p3 = scmp.ne.s32.totalorder %s2152_s9, %s1933_s17  ;;  %p1937_p4 = scmp.lt.u32.totalorder %s1933_s17, %s2152_s9 }
 0x3ff   :  { %p1939_p5 = pnand %p1937_p4, %p1934_p3 }
 0x401   :  { %1942 = shalt.err (!%p1939_p5)
}
 0x402   :  { %1422 = dma.vmem_to_hbm [thread:$0]  %s1417_s18, 512, %s2152_s9, [#allocation5], %s1953_s21, %s1953_s21, %s1954_s22  }
 0x403   :  { %1949 = dma.done.wait [#allocation5], 512  }
 0x404   :  { %1950 = vsyncadd [#allocation5], 4294966784 }
 0x405   :  { %1426 = vsyncpa [#allocation4], 1 }
 0x406   :  { %1427 = vsyncpa [#allocation7], 1 }
 0x407   :  { %1428 = vsyncpa [#allocation10], 1 }
 0x408   :  { %1429 = vsyncpa [#allocation5], 1 }

</bundles_post_ra>
